<compile_context>
chip_gen: v7x
topology: tpu7x:2x2x1
jax: 0.10.0
libtpu: 0.0.40
codegen_flags: <defaults>
</compile_context>

<pallas_src>
import math

import jax
import jax.numpy as jnp
from jax.experimental import pallas as pl
from jax.experimental.pallas import tpu as pltpu


_GELU_C = 0.7978845608028654      # sqrt(2/pi)
_GELU_K = 0.044715


def _gelu_tanh(x):
    # tanh-form GELU: 0.5*x*(1 + tanh(sqrt(2/pi)*(x + 0.044715*x^3))).
    # tanh lowers to the EUP (separate VLIW slot), leaving only a handful of
    # VALU ops per element; |gelu_tanh - gelu_erf| <~ 1e-3, inside tolerance.
    return 0.5 * x * (1.0 + jnp.tanh(_GELU_C * (x + _GELU_K * x * x * x)))


def _recon_block_kernel(x_ref, w1_ref, b1_ref, w2_ref, b2_ref, o_ref):
    # x_ref: (tm, D) bf16; w1_ref: (D, Hd) bf16; b1_ref: (1, Hd) f32
    # w2_ref: (Hd, N) bf16; b2_ref: (1, N) f32; o_ref: (tm, N) out dtype
    h = jnp.dot(x_ref[...], w1_ref[...], preferred_element_type=jnp.float32)
    h = _gelu_tanh(h + b1_ref[...])
    # Dropout: inference-mode identity (see TODO at top of file).
    y = jnp.dot(h.astype(jnp.bfloat16), w2_ref[...],
                preferred_element_type=jnp.float32)
    o_ref[...] = (y + b2_ref[...]).astype(o_ref.dtype)


def _round_up(x, m):
    return ((x + m - 1) // m) * m


def _pick_row_tile(M, tm):
    """Sublane-aligned row tile; aims for >= 4 grid steps (>= 2 per v7x core)."""
    tm = max(8, min(tm, _round_up(M, 8)))
    min_steps = 4 if M >= 32 else (2 if M > 8 else 1)
    if pl.cdiv(M, tm) < min_steps:
        tm = max(8, _round_up(pl.cdiv(M, min_steps), 8))
    return tm


def recon_block_mlp(x2d, w1, b1, w2, b2, *, tm=2048, out_dtype=None):
    """out[M, 3*p*p] = fc2(gelu(fc1(x2d) + b1)) + b2, fully fused in one kernel.

    The (M, hidden) intermediate lives only in VMEM; weights/biases are
    VMEM-resident across all grid steps (constant index_maps).
    """
    M, D = x2d.shape
    Dw, Hd = w1.shape
    Hw, N = w2.shape
    assert D == Dw and Hd == Hw
    if out_dtype is None:
        out_dtype = jnp.float32

    tm = _pick_row_tile(M, tm)
    grid_m = pl.cdiv(M, tm)

    # bf16 activations/weights for the MXU + halved HBM traffic; f32 biases.
    x2d_bf = x2d.astype(jnp.bfloat16)
    w1_bf = w1.astype(jnp.bfloat16)
    w2_bf = w2.astype(jnp.bfloat16)
    b1_2d = b1.astype(jnp.float32).reshape(1, Hd)
    b2_2d = b2.astype(jnp.float32).reshape(1, N)

    cost = pl.CostEstimate(
        flops=2 * M * (D * Hd + Hd * N),
        transcendentals=M * Hd,                          # one tanh per GELU element
        bytes_accessed=(2 * M * D                        # x read (bf16)
                        + 2 * D * Hd + 4 * Hd            # fc1 weight/bias
                        + 2 * Hd * N + 4 * N             # fc2 weight/bias
                        + 4 * M * N),                    # output write (f32)
    )

    return pl.pallas_call(
        _recon_block_kernel,
        out_shape=jax.ShapeDtypeStruct((M, N), out_dtype),
        grid_spec=pltpu.PrefetchScalarGridSpec(
            num_scalar_prefetch=0,
            grid=(grid_m,),
            in_specs=[
                pl.BlockSpec((tm, D), lambda i: (i, 0)),    # x row tile (bf16)
                pl.BlockSpec((D, Hd), lambda i: (0, 0)),    # fc1 weight (VMEM-resident)
                pl.BlockSpec((1, Hd), lambda i: (0, 0)),    # fc1 bias   (VMEM-resident)
                pl.BlockSpec((Hd, N), lambda i: (0, 0)),    # fc2 weight (VMEM-resident)
                pl.BlockSpec((1, N), lambda i: (0, 0)),     # fc2 bias   (VMEM-resident)
            ],
            out_specs=pl.BlockSpec((tm, N), lambda i: (i, 0)),
        ),
        compiler_params=pltpu.CompilerParams(
            dimension_semantics=("parallel",),
            vmem_limit_bytes=32 * 1024 * 1024,   # > v5e's 16 MiB default, < v7x physical
        ),
        cost_estimate=cost,
    )(x2d_bf, w1_bf, b1_2d, w2_bf, b2_2d)


class ReconstructionBlockPallas:
    """JAX/Pallas port of the PyTorch ReconstructionBlock (inference forward)."""

    def __init__(self, patch_size=2, d_embed=128, hidden_dim=128 * 4, dropout=0.1,
                 key=None):
        self.patch_size = patch_size
        self.d_embed = d_embed
        self.hidden_dim = hidden_dim
        self.dropout = dropout                 # inference: unused (identity)
        out_dim = 3 * patch_size ** 2

        if key is None:
            key = jax.random.PRNGKey(0)
        k1, k2 = jax.random.split(key)

        # xavier_uniform_ on torch weights of shape (out, in): bound = sqrt(6/(in+out)).
        # Stored transposed, (in, out), so the kernel computes x @ W directly.
        # Weights are sampled in f32 and stored bf16 (halves weight DMA, native MXU
        # dtype); biases stay f32 and are added to the f32 accumulators.
        bound1 = math.sqrt(6.0 / (d_embed + hidden_dim))
        self.w1 = jax.random.uniform(k1, (d_embed, hidden_dim), jnp.float32,
                                     -bound1, bound1).astype(jnp.bfloat16)
        self.b1 = jnp.zeros((hidden_dim,), jnp.float32)       # zeros_
        bound2 = math.sqrt(6.0 / (hidden_dim + out_dim))
        self.w2 = jax.random.uniform(k2, (hidden_dim, out_dim), jnp.float32,
                                     -bound2, bound2).astype(jnp.bfloat16)
        self.b2 = jnp.zeros((out_dim,), jnp.float32)          # zeros_

    def __call__(self, x):
        """
        x : (n_batch, H, W, d_embed)  ->  (n_batch, 3, H*patch, W*patch)
        """
        n_batch, H, W, D = x.shape
        assert D == self.d_embed
        p = self.patch_size

        x2d = x.reshape(n_batch * H * W, D)
        y2d = recon_block_mlp(x2d, self.w1, self.b1, self.w2, self.b2,
                              out_dtype=x.dtype)            # (M, 3*p*p)

        # Patch unfold: pure layout glue on a tiny (M, 3*p*p) tensor.
        y = y2d.reshape(n_batch, H, W, 3, p, p)
        y = jnp.transpose(y, (0, 3, 1, 4, 2, 5))
        return y.reshape(n_batch, 3, H * p, W * p)


def _reference(x, w1, b1, w2, b2, patch_size):
    # f32, exact-erf GELU reference (matches torch nn.GELU() semantics), using the
    # same (bf16-rounded) weights the kernel sees.
    n, H, W, _ = x.shape
    p = patch_size
    w1f = w1.astype(jnp.float32)
    w2f = w2.astype(jnp.float32)
    h = jnp.dot(x, w1f, precision=jax.lax.Precision.HIGHEST) + b1
    h = jax.nn.gelu(h, approximate=False)
    y = jnp.dot(h, w2f, precision=jax.lax.Precision.HIGHEST) + b2
    y = y.reshape(n, H, W, 3, p, p)
    y = jnp.transpose(y, (0, 3, 1, 4, 2, 5))
    return y.reshape(n, 3, H * p, W * p)


if __name__ == "__main__":
    key = jax.random.PRNGKey(0)
    k_x, k_w = jax.random.split(key)

    # Small shapes consistent with the module defaults: x = (n_batch, H, W, d_embed).
    n_batch, H, W = 2, 16, 16
    patch_size, d_embed, hidden_dim = 2, 128, 128 * 4

    x = jax.random.normal(k_x, (n_batch, H, W, d_embed), dtype=jnp.float32)

    block = ReconstructionBlockPallas(patch_size=patch_size, d_embed=d_embed,
                                      hidden_dim=hidden_dim, key=k_w)

    out = jax.block_until_ready(block(x))
    assert out.shape == (n_batch, 3, H * patch_size, W * patch_size), out.shape

    ref = _reference(x, block.w1, block.b1, block.w2, block.b2, patch_size)
    # Tolerance covers bf16 activation rounding, MXU accumulation order, and the
    # tanh-GELU vs exact-erf GELU delta (all << 3e-2 against an O(0.4)-std output).
    err = float(jnp.max(jnp.abs(out - ref)))
    assert jnp.allclose(out, ref, atol=3e-2, rtol=3e-2), err

    print("KERNEL_OK")
</pallas_src>

<mosaic_0001>
module attributes {stable_mosaic.version = 11 : i64} {
  func.func @_recon_block_kernel(%arg0: i32, %arg1: memref<128x128xbf16, #tpu.memory_space<vmem>>, %arg2: memref<128x512xbf16, #tpu.memory_space<vmem>>, %arg3: memref<1x512xf32, #tpu.memory_space<vmem>>, %arg4: memref<512x12xbf16, #tpu.memory_space<vmem>>, %arg5: memref<1x12xf32, #tpu.memory_space<vmem>>, %arg6: memref<128x12xf32, #tpu.memory_space<vmem>>) attributes {dimension_semantics = [#tpu.dimension_semantics<parallel>], iteration_bounds = array<i64: 4>, scalar_prefetch = 0 : i64, scratch_operands = 0 : i64, tpu.core_type = #tpu.core_type<tc>, window_params = [{transform_indices = @transform_0, window_bounds = array<i64: 128, 128>}, {pipeline_mode = #tpu.pipeline_mode<synchronous>, transform_indices = @transform_1, window_bounds = array<i64: 128, 512>}, {pipeline_mode = #tpu.pipeline_mode<synchronous>, transform_indices = @transform_2, window_bounds = array<i64: 1, 512>}, {pipeline_mode = #tpu.pipeline_mode<synchronous>, transform_indices = @transform_3, window_bounds = array<i64: 512, 12>}, {pipeline_mode = #tpu.pipeline_mode<synchronous>, transform_indices = @transform_4, window_bounds = array<i64: 1, 12>}, {transform_indices = @transform_5, window_bounds = array<i64: 128, 12>}]} {
    %c0 = arith.constant 0 : index
    %c0_0 = arith.constant 0 : index
    %0 = vector.load %arg1[%c0, %c0_0] : memref<128x128xbf16, #tpu.memory_space<vmem>>, vector<128x128xbf16>
    %c0_1 = arith.constant 0 : index
    %c0_2 = arith.constant 0 : index
    %1 = vector.load %arg2[%c0_1, %c0_2] : memref<128x512xbf16, #tpu.memory_space<vmem>>, vector<128x512xbf16>
    %cst = arith.constant dense<0.000000e+00> : vector<128x512xf32>
    %2 = tpu.matmul %0, %1, %cst {dimension_numbers = #tpu.dot_dimension_numbers<[1], [0], [0], [1], [0, 0, 1, 1], [], []>} : vector<128x128xbf16>, vector<128x512xbf16>, vector<128x512xf32> -> vector<128x512xf32>
    %c0_3 = arith.constant 0 : index
    %c0_4 = arith.constant 0 : index
    %3 = vector.load %arg3[%c0_3, %c0_4] : memref<1x512xf32, #tpu.memory_space<vmem>>, vector<1x512xf32>
    %4 = vector.broadcast %3 : vector<1x512xf32> to vector<128x512xf32>
    %5 = arith.addf %2, %4 : vector<128x512xf32>
    %cst_5 = arith.constant 5.000000e-01 : f32
    %6 = vector.broadcast %cst_5 : f32 to vector<128x512xf32>
    %7 = arith.mulf %6, %5 : vector<128x512xf32>
    %cst_6 = arith.constant 4.471500e-02 : f32
    %8 = vector.broadcast %cst_6 : f32 to vector<128x512xf32>
    %9 = arith.mulf %8, %5 : vector<128x512xf32>
    %10 = arith.mulf %9, %5 : vector<128x512xf32>
    %11 = arith.mulf %10, %5 : vector<128x512xf32>
    %12 = arith.addf %5, %11 : vector<128x512xf32>
    %cst_7 = arith.constant 0.797884583 : f32
    %13 = vector.broadcast %cst_7 : f32 to vector<128x512xf32>
    %14 = arith.mulf %13, %12 : vector<128x512xf32>
    %15 = math.tanh %14 : vector<128x512xf32>
    %cst_8 = arith.constant 1.000000e+00 : f32
    %16 = vector.broadcast %cst_8 : f32 to vector<128x512xf32>
    %17 = arith.addf %16, %15 : vector<128x512xf32>
    %18 = arith.mulf %7, %17 : vector<128x512xf32>
    %19 = arith.truncf %18 : vector<128x512xf32> to vector<128x512xbf16>
    %c0_9 = arith.constant 0 : index
    %c0_10 = arith.constant 0 : index
    %20 = vector.load %arg4[%c0_9, %c0_10] : memref<512x12xbf16, #tpu.memory_space<vmem>>, vector<512x12xbf16>
    %cst_11 = arith.constant dense<0.000000e+00> : vector<128x12xf32>
    %21 = tpu.matmul %19, %20, %cst_11 {dimension_numbers = #tpu.dot_dimension_numbers<[1], [0], [0], [1], [0, 0, 1, 1], [], []>} : vector<128x512xbf16>, vector<512x12xbf16>, vector<128x12xf32> -> vector<128x12xf32>
    %c0_12 = arith.constant 0 : index
    %c0_13 = arith.constant 0 : index
    %22 = vector.load %arg5[%c0_12, %c0_13] : memref<1x12xf32, #tpu.memory_space<vmem>>, vector<1x12xf32>
    %23 = vector.broadcast %22 : vector<1x12xf32> to vector<128x12xf32>
    %24 = arith.addf %21, %23 : vector<128x12xf32>
    %c0_14 = arith.constant 0 : index
    %c0_15 = arith.constant 0 : index
    %25 = vector.load %arg6[%c0_14, %c0_15] : memref<128x12xf32, #tpu.memory_space<vmem>>, vector<128x12xf32>
    tpu.vector_store %arg6[%c0_14, %c0_15], %24 {strides = array<i32>} : memref<128x12xf32, #tpu.memory_space<vmem>>, vector<128x12xf32>,
    return
  }
  func.func @transform_0(%arg0: i32) -> (i32, i32) {
    %c0_i32 = arith.constant 0 : i32
    %c0_i32_0 = arith.constant 0 : i32
    return %arg0, %c0_i32 : i32, i32
  }
  func.func @transform_1(%arg0: i32) -> (i32, i32) {
    %c0_i32 = arith.constant 0 : i32
    %c0_i32_0 = arith.constant 0 : i32
    %c0_i32_1 = arith.constant 0 : i32
    return %c0_i32, %c0_i32_0 : i32, i32
  }
  func.func @transform_2(%arg0: i32) -> (i32, i32) {
    %c0_i32 = arith.constant 0 : i32
    %c0_i32_0 = arith.constant 0 : i32
    %c0_i32_1 = arith.constant 0 : i32
    return %c0_i32, %c0_i32_0 : i32, i32
  }
  func.func @transform_3(%arg0: i32) -> (i32, i32) {
    %c0_i32 = arith.constant 0 : i32
    %c0_i32_0 = arith.constant 0 : i32
    %c0_i32_1 = arith.constant 0 : i32
    return %c0_i32, %c0_i32_0 : i32, i32
  }
  func.func @transform_4(%arg0: i32) -> (i32, i32) {
    %c0_i32 = arith.constant 0 : i32
    %c0_i32_0 = arith.constant 0 : i32
    %c0_i32_1 = arith.constant 0 : i32
    return %c0_i32, %c0_i32_0 : i32, i32
  }
  func.func @transform_5(%arg0: i32) -> (i32, i32) {
    %c0_i32 = arith.constant 0 : i32
    %c0_i32_0 = arith.constant 0 : i32
    return %arg0, %c0_i32 : i32, i32
  }
}

</mosaic_0001>

<bundles_post_ra>
// kernel: tpu_custom_call.1
= control target key start
LH: loop header
LB: loop body
LE: loop exit
PB: predicated region body
PF: predicated region fallthrough
CT: control target
= control target key end

     0   :  { %10 = vsyncpa [#allocation3], 0  ;;  %s2424_s18 = smov 0   ;;  %s3465_s0 = inlined_call_operand.vmem [shape: bf16[512,128], index: 0, kind: input, shape index: {}]   ;;  %s3466_s1 = inlined_call_operand.hbm [shape: bf16[128,512], index: 1, kind: input, shape index: {}]   ;;  %s3467_s2 = inlined_call_operand.vmem [shape: f32[1,512], index: 2, kind: input, shape index: {}]   ;;  %s3468_s3 = inlined_call_operand.vmem [shape: bf16[512,12], index: 3, kind: input, shape index: {}]   ;;  %s3469_s4 = inlined_call_operand.vmem [shape: f32[1,12], index: 4, kind: input, shape index: {}]   ;;  %s3470_s5 = inlined_call_operand.vmem [shape: f32[512,12], index: 5, kind: output, shape index: {}]  }
   0x1 LB: > { %s1898_s19 = sadd.s32 4294967295, %s2388_s18   ;;  %p1900_p0 = scmp.ge.s32.totalorder %s2388_s18, 1  ;;  %s2388_s18 = sphi %s2424_s18, %s16_s18  }
   0x2   : > { %p157_p1 = scmp.lt.s32.totalorder %s2388_s18, 5  ;;  %s2390_s20 = smov [#allocation2]  }
   0x3   : > { %s169_s21 = sshll.u32 %s2390_s20, 4  ;;  %p2438_p3 = scmp.eq.s32.totalorder %s1898_s19, 0  ;;  %s170_s21 = int_to_ptr.vmem [resolvable:$true] %s169_s21 }
   0x4   : > { %p2432_p2 = pnand %p1900_p0, %p157_p1  ;;  %s2350_s27 = scalar_lea.hbm %s3466_s1, 4096 }
   0x5   : > { %s3537_s23 = scalar_select %p2438_p3, 1, 0 }
   0x6   : > { %s3536_s22 = scalar_select %p2432_p2, 1, 0 }
   0x7   : > { %p2116_p4 = pneg %p2432_p2  ;;  %p2351_p6 = scmp.ne.s32.totalorder %s3466_s1, %s2350_s27 }
   0x8   : > { %p2357_p10 = scmp.lt.u32.totalorder %s2350_s27, %s3466_s1 }
   0x9   : > { %p2446_p5 = pnand %p2438_p3, %p2116_p4 }
   0xb   : > { %p2352_p7 = pneg %p2446_p5 }
   0xd   : > { %p2353_p8 = pnand %p2352_p7, %p2351_p6 }
   0xf   : > { %p2354_p9 = pneg %p2353_p8 }
  0x11   : > { %p2359_p11 = pnand %p2357_p10, %p2354_p9 }
  0x13   : > { %2362 = shalt.err (!%p2359_p11)
}
  0x14   : > { %s2363_s7 = scalar_lea.vmem %s170_s21, 4096  ;;  %p2371_p1 = scmp.lt.s32.totalorder %s170_s21, %s170_s21 }
  0x15   : > { %p2364_p12 = scmp.ne.s32.totalorder %s170_s21, %s2363_s7  ;;  %p2372_p4 = scmp.lt.s32.totalorder %s2363_s7, %s2363_s7 }
  0x17   : > { %p2366_p13 = pnand %p2364_p12, %p2352_p7  ;;  %p2373_p3 = por %p2372_p4, %p2371_p1 }
  0x19   : > { %p2367_p0 = pneg %p2366_p13 }
  0x1b   : > { %p2374_p2 = pnand %p2373_p3, %p2367_p0 }
  0x1d   : > { %2377 = shalt.err (!%p2374_p2)
}
  0x1e   : > { %s2391_s8 = smov 256   ;;  %s2392_s9 = smov 16  }
  0x1f   : > { %2119 = dma.hbm_to_vmem [thread:$0]  (!%p2446_p5), %s3466_s1, 4096, %s170_s21, [#allocation3], %s2391_s8, %s2391_s8, %s2392_s9  }
  0x20   : > { %p3539_p6 = scmp.ne.s32.totalorder %s3536_s22, 0 }
  0x22   : > { %203 = sbr.rel (%p3539_p6) target bundleno = 690 (0x2b2), region = 40 }
  0x29   : > { %p3540_p8 = scmp.ne.s32.totalorder %s3537_s23, 0 }
  0x2b   : > { %2383 = dma.done.wait (%p3540_p8), [#allocation3], 4096  }
  0x2c   : > { %2385 = vsyncadd (%p3540_p8), [#allocation3], 4294963200  ;;  %v2393_v0 = vmov 0   ;;  %v2134_v1 = vld [vmem:[#allocation2 + $0x4] ss:$16 sps:$4 sm:$0xff]   ;;  %s1905_s12 = sshll.u32 %s1898_s19, 4 }
  0x2d   : > { %554 = vmatprep.mubr.bf16.mxu0 %v2393_v0  ;;  %667 = vmatprep.mubr.bf16.mxu1 %v2393_v0  ;;  %v2136_v2 = vld [vmem:[#allocation2 + $0xc] ss:$16 sps:$4 sm:$0xff]   ;;  %v2138_v3 = vld [vmem:[#allocation2] ss:$16 sps:$4 sm:$0xff]   ;;  %v2139_v4 = vld [vmem:[#allocation2 + $0x8] ss:$16 sps:$4 sm:$0xff]  }
  0x2e   : > { %522 = vmatprep.subr.bf16.mxu0 %v2134_v1  ;;  %635 = vmatprep.subr.bf16.mxu1 %v2136_v2  ;;  %v2140_v5 = vld [vmem:[#allocation2 + $0x24] ss:$16 sps:$4 sm:$0xff]   ;;  %v2142_v6 = vld [vmem:[#allocation2 + $0x2c] ss:$16 sps:$4 sm:$0xff]   ;;  %v2144_v7 = vld [vmem:[#allocation2 + $0x20] ss:$16 sps:$4 sm:$0xff]  }
  0x2f   : > { %523 = vmatpush1.bf16.msra.mxu0 %v2138_v3  ;;  %636 = vmatpush1.bf16.msra.mxu1 %v2139_v4  ;;  %v2145_v8 = vld [vmem:[#allocation2 + $0x28] ss:$16 sps:$4 sm:$0xff]   ;;  %v2146_v9 = vld [vmem:[#allocation2 + $0x44] ss:$16 sps:$4 sm:$0xff]   ;;  %v2148_v10 = vld [vmem:[#allocation2 + $0x4c] ss:$16 sps:$4 sm:$0xff]  }
  0x30   : > { %524 = vmatprep.subr.bf16.mxu0 %v2140_v5  ;;  %637 = vmatprep.subr.bf16.mxu1 %v2142_v6  ;;  %v2150_v11 = vld [vmem:[#allocation2 + $0x40] ss:$16 sps:$4 sm:$0xff]   ;;  %v2151_v12 = vld [vmem:[#allocation2 + $0x48] ss:$16 sps:$4 sm:$0xff]   ;;  %v2152_v13 = vld [vmem:[#allocation2 + $0x64] ss:$16 sps:$4 sm:$0xff]  }
  0x31   : > { %v2154_v14 = vld [vmem:[#allocation2 + $0x6c] ss:$16 sps:$4 sm:$0xff]   ;;  %p232_p2 = scmp.lt.s32.totalorder %s1905_s12, 63  ;;  %v2156_v15 = vld [vmem:[#allocation2 + $0x60] ss:$16 sps:$4 sm:$0xff]   ;;  %vm1813_vm0 = vcmask 97280  }
  0x32   : > { %v2157_v16 = vld [vmem:[#allocation2 + $0x68] ss:$16 sps:$4 sm:$0xff]   ;;  %v2158_v17 = vld [vmem:[#allocation2 + $0x84] ss:$16 sps:$4 sm:$0xff]   ;;  %v2160_v18 = vld [vmem:[#allocation2 + $0x8c] ss:$16 sps:$4 sm:$0xff]  }
  0x33   : > { %525 = vmatpush1.bf16.msra.mxu0 %v2144_v7  ;;  %638 = vmatpush1.bf16.msra.mxu1 %v2145_v8  ;;  %s3686_s12 = smov (!%p232_p2, %s1905_s12), 63  ;;  %v2162_v19 = vld [vmem:[#allocation2 + $0x80] ss:$16 sps:$4 sm:$0xff]   ;;  %v2163_v20 = vld [vmem:[#allocation2 + $0x88] ss:$16 sps:$4 sm:$0xff]  }
  0x34   : > { %526 = vmatprep.subr.bf16.mxu0 %v2146_v9  ;;  %639 = vmatprep.subr.bf16.mxu1 %v2148_v10  ;;  %v2164_v21 = vld [vmem:[#allocation2 + $0xa4] ss:$16 sps:$4 sm:$0xff]   ;;  %v2166_v22 = vld [vmem:[#allocation2 + $0xac] ss:$16 sps:$4 sm:$0xff]   ;;  %s1906_s13 = sshll.u32 %s3686_s12, 2  ;;  %v294_v9 = vlaneseq  ;;  %s1908_s17 = sshll.u32 %s3686_s12, 3 }
  0x35   : > { %v2168_v23 = vld [vmem:[#allocation2 + $0xa0] ss:$16 sps:$4 sm:$0xff]   ;;  %v2169_v24 = vld [vmem:[#allocation2 + $0xa8] ss:$16 sps:$4 sm:$0xff]   ;;  %v2170_v25 = vld [vmem:[#allocation2 + $0xc4] ss:$16 sps:$4 sm:$0xff]   ;;  %s2482_s16 = scalar_lea.vmem %s3465_s0, %s1906_s13  ;;  %s3413_s21 = scalar_lea.vmem %s3470_s5, %s1908_s17 }
  0x36   : > { %v2172_v26 = vld [vmem:[#allocation2 + $0xcc] ss:$16 sps:$4 sm:$0xff]   ;;  %v2174_v27 = vld [vmem:[#allocation2 + $0xc0] ss:$16 sps:$4 sm:$0xff]   ;;  %v2175_v28 = vld [vmem:[#allocation2 + $0xc8] ss:$16 sps:$4 sm:$0xff]  }
  0x37   : > { %527 = vmatpush1.bf16.msra.mxu0 %v2150_v11  ;;  %640 = vmatpush1.bf16.msra.mxu1 %v2151_v12  ;;  %v2176_v29 = vld [vmem:[#allocation2 + $0xe4] ss:$16 sps:$4 sm:$0xff]   ;;  %v2178_v30 = vld [vmem:[#allocation2 + $0xec] ss:$16 sps:$4 sm:$0xff]   ;;  %v2180_v31 = vld [vmem:[#allocation2 + $0xe0] ss:$16 sps:$4 sm:$0xff]  }
  0x38   : > { %528 = vmatprep.subr.bf16.mxu0 %v2152_v13  ;;  %641 = vmatprep.subr.bf16.mxu1 %v2154_v14  ;;  %v2181_v32 = vld [vmem:[#allocation2 + $0xe8] ss:$16 sps:$4 sm:$0xff]   ;;  %v2182_v33 = vld [vmem:[%s2482_s16] sm:$0xff]   ;;  %v2198_v43 = vld [vmem:[%s3468_s3 + $0x50] sm:$0xff]   ;;  %v295_v10 = vshrl.u32 %v294_v9, 7 }
  0x39   : > { %v2190_v34 = vld [vmem:[%s3468_s3 + $0x40] sm:$0xff]   ;;  %v2194_v38 = vld [vmem:[%s3468_s3 + $0x48] sm:$0xff]   ;;  %v2199_v44 = vld [vmem:[%s3468_s3 + $0x10] sm:$0xff]  }
  0x3a   : > { %v2191_v35 = vld [vmem:[%s3468_s3] sm:$0xff]   ;;  %v2195_v39 = vld [vmem:[%s3468_s3 + $0x8] sm:$0xff]   ;;  %v2200_v45 = vld [vmem:[%s3468_s3 + $0xd0] sm:$0xff]   ;;  %v296_v11 = vsub.s32 0, %v295_v10  ;;  %v304_v12 = vsub.s32 2, %v295_v10  ;;  %v300_v14 = vsub.s32 1, %v295_v10 }
  0x3b   : > { %529 = vmatpush1.bf16.msra.mxu0 %v2156_v15  ;;  %642 = vmatpush1.bf16.msra.mxu1 %v2157_v16  ;;  %v2192_v36 = vld [vmem:[%s3468_s3 + $0xc0] sm:$0xff]   ;;  %v2196_v40 = vld [vmem:[%s3468_s3 + $0xc8] sm:$0xff]   ;;  %v2201_v46 = vld [vmem:[%s3468_s3 + $0x90] sm:$0xff]   ;;  %v308_v15 = vsub.s32 3, %v295_v10 }
  0x3c   : > { %530 = vmatprep.subr.bf16.mxu0 %v2158_v17  ;;  %643 = vmatprep.subr.bf16.mxu1 %v2160_v18  ;;  %v2193_v37 = vld [vmem:[%s3468_s3 + $0x80] sm:$0xff]   ;;  %v2183_v41 = vld [vmem:[%s2482_s16 + $0x8] sm:$0xff]   ;;  %v2202_v47 = vld [vmem:[%s3468_s3 + $0x58] sm:$0xff]  }
  0x3d   : > { %v2197_v42 = vld [vmem:[%s3468_s3 + $0x88] sm:$0xff]   ;;  %v2204_v48 = vld [vmem:[%s3468_s3 + $0xd8] sm:$0xff]   ;;  %v2184_v49 = vld [vmem:[%s2482_s16 + $0x10] sm:$0xff]  }
  0x3e   : > { %v2203_v50 = vld [vmem:[%s3468_s3 + $0x18] sm:$0xff]   ;;  %v2186_v53 = vld [vmem:[%s2482_s16 + $0x20] sm:$0xff]   ;;  %v2187_v54 = vld [vmem:[%s2482_s16 + $0x28] sm:$0xff]  }
  0x3f   : > { %531 = vmatpush1.bf16.msra.mxu0 %v2162_v19  ;;  %644 = vmatpush1.bf16.msra.mxu1 %v2163_v20  ;;  %v2205_v51 = vld [vmem:[%s3468_s3 + $0x98] sm:$0xff]   ;;  %v2188_v55 = vld [vmem:[%s2482_s16 + $0x30] sm:$0xff]   ;;  %v2206_v57 = vld [vmem:[%s3468_s3 + $0x60] sm:$0xff]  }
  0x40   : > { %532 = vmatprep.subr.bf16.mxu0 %v2164_v21  ;;  %645 = vmatprep.subr.bf16.mxu1 %v2166_v22  ;;  %v2185_v52 = vld [vmem:[%s2482_s16 + $0x18] sm:$0xff]   ;;  %v2207_v58 = vld [vmem:[%s3468_s3 + $0x20] sm:$0xff]   ;;  %v2210_v61 = vld [vmem:[%s3468_s3 + $0x68] sm:$0xff]  }
  0x41   : > { %v2189_v56 = vld [vmem:[%s2482_s16 + $0x38] sm:$0xff]   ;;  %v2208_v59 = vld [vmem:[%s3468_s3 + $0xe0] sm:$0xff]   ;;  %v2211_v62 = vld [vmem:[%s3468_s3 + $0x28] sm:$0xff]  }
  0x42   : > { %v2209_v60 = vld [vmem:[%s3468_s3 + $0xa0] sm:$0xff]   ;;  %v2212_v63 = vld [vmem:[%s3468_s3 + $0xe8] sm:$0xff]   ;;  %v2214_v1 = vld [vmem:[%s3468_s3 + $0x70] sm:$0xff]  }
  0x43   : > { %533 = vmatpush1.bf16.msra.mxu0 %v2168_v23  ;;  %646 = vmatpush1.bf16.msra.mxu1 %v2169_v24  ;;  %v2215_v2 = vld [vmem:[%s3468_s3 + $0x30] sm:$0xff]   ;;  %v2218_v5 = vld [vmem:[%s3468_s3 + $0x78] sm:$0xff]   ;;  %v292_v13 = vld [vmem:[%s3467_s2] sm:$0xf] }
  0x44   : > { %534 = vmatprep.subr.bf16.mxu0 %v2170_v25  ;;  %647 = vmatprep.subr.bf16.mxu1 %v2172_v26  ;;  %v2216_v3 = vld [vmem:[%s3468_s3 + $0xf0] sm:$0xff]   ;;  %v2220_v6 = vld [vmem:[%s3468_s3 + $0xf8] sm:$0xff]   ;;  %v2605_v16 = vrot.slane %v292_v13, %v296_v11  ;;  %v2607_v17 = vrot.slane %v292_v13, %v304_v12  ;;  %v2609_v18 = vrot.slane %v292_v13, %v300_v14 }
  0x45   : > { %v2217_v4 = vld [vmem:[%s3468_s3 + $0xb0] sm:$0xff]   ;;  %v2219_v7 = vld [vmem:[%s3468_s3 + $0x38] sm:$0xff]   ;;  %v2611_v19 = vrot.slane %v292_v13, %v308_v15 }
  0x46   : > { %v2221_v8 = vld [vmem:[%s3468_s3 + $0xb8] sm:$0xff]  }
  0x47   : > { %535 = vmatpush1.bf16.msra.mxu0 %v2174_v27  ;;  %648 = vmatpush1.bf16.msra.mxu1 %v2175_v28 }
  0x48   : > { %536 = vmatprep.subr.bf16.mxu0 %v2176_v29  ;;  %649 = vmatprep.subr.bf16.mxu1 %v2178_v30 }
  0x4b   : > { %537 = vmatpush1.bf16.msra.mxu0 %v2180_v31  ;;  %650 = vmatpush1.bf16.msra.mxu1 %v2181_v32 }
  0x4c   : > { %1984 = vmatprep.subr.bf16.mxu0 %v2190_v34  ;;  %2048 = vmatprep.subr.bf16.mxu1 %v2192_v36 }
  0x4e   : > { %555 = vmatmul.mubr.bf16.vlgmr.msra.gmra.mrb[0].mxu0 %v2182_v33  ;;  %668 = vmatmul.mubr.bf16.vlgmr.msra.gmra.mrb[0].mxu1 %v2182_v33 }
  0x4f   : > { %564 = vmatprep.mubr.bf16.mxu0 %v2393_v0  ;;  %677 = vmatprep.mubr.bf16.mxu1 %v2393_v0 }
  0x50   : > { %1985 = vmatpush3.bf16.msra.mxu0 %v2191_v35  ;;  %2049 = vmatpush3.bf16.msra.mxu1 %v2193_v37 }
  0x51   : > { %1986 = vmatprep.subr.bf16.mxu0 %v2194_v38  ;;  %2050 = vmatprep.subr.bf16.mxu1 %v2196_v40 }
  0x54   : > { %1987 = vmatpush3.bf16.msra.mxu0 %v2195_v39  ;;  %2051 = vmatpush3.bf16.msra.mxu1 %v2197_v42 }
  0x55   : > { %1988 = vmatprep.subr.bf16.mxu0 %v2198_v43  ;;  %2052 = vmatprep.subr.bf16.mxu1 %v2200_v45 }
  0x56   : > { %565 = vmatmul.mubr.bf16.gmra.mrb[4].mxu0 %v2183_v41  ;;  %678 = vmatmul.mubr.bf16.gmra.mrb[4].mxu1 %v2183_v41 }
  0x57   : > { %574 = vmatprep.mubr.bf16.mxu0 %v2393_v0  ;;  %687 = vmatprep.mubr.bf16.mxu1 %v2393_v0 }
  0x58   : > { %1989 = vmatpush3.bf16.msra.mxu0 %v2199_v44  ;;  %2053 = vmatpush3.bf16.msra.mxu1 %v2201_v46 }
  0x59   : > { %1990 = vmatprep.subr.bf16.mxu0 %v2202_v47  ;;  %2054 = vmatprep.subr.bf16.mxu1 %v2204_v48 }
  0x5c   : > { %1991 = vmatpush3.bf16.msra.mxu0 %v2203_v50  ;;  %2055 = vmatpush3.bf16.msra.mxu1 %v2205_v51 }
  0x5d   : > { %1992 = vmatprep.subr.bf16.mxu0 %v2206_v57  ;;  %2056 = vmatprep.subr.bf16.mxu1 %v2208_v59 }
  0x5e   : > { %575 = vmatmul.mubr.bf16.gmra.mrb[8].mxu0 %v2184_v49  ;;  %688 = vmatmul.mubr.bf16.gmra.mrb[8].mxu1 %v2184_v49 }
  0x5f   : > { %584 = vmatprep.mubr.bf16.mxu0 %v2393_v0  ;;  %697 = vmatprep.mubr.bf16.mxu1 %v2393_v0 }
  0x60   : > { %1993 = vmatpush3.bf16.msra.mxu0 %v2207_v58  ;;  %2057 = vmatpush3.bf16.msra.mxu1 %v2209_v60 }
  0x61   : > { %1994 = vmatprep.subr.bf16.mxu0 %v2210_v61  ;;  %2058 = vmatprep.subr.bf16.mxu1 %v2212_v63 }
  0x64   : > { %1995 = vmatpush3.bf16.msra.mxu0 %v2211_v62 }
  0x65   : > { %1996 = vmatprep.subr.bf16.mxu0 %v2214_v1 }
  0x66   : > { %585 = vmatmul.mubr.bf16.gmra.mrb[12].mxu0 %v2185_v52  ;;  %698 = vmatmul.mubr.bf16.gmra.mrb[12].mxu1 %v2185_v52 }
  0x67   : > { %594 = vmatprep.mubr.bf16.mxu0 %v2393_v0  ;;  %707 = vmatprep.mubr.bf16.mxu1 %v2393_v0 }
  0x68   : > { %1997 = vmatpush3.bf16.msra.mxu0 %v2215_v2 }
  0x69   : > { %1998 = vmatprep.subr.bf16.mxu0 %v2218_v5 }
  0x6c   : > { %1999 = vmatpush3.bf16.msra.mxu0 %v2219_v7 }
  0x6e   : > { %595 = vmatmul.mubr.bf16.gmra.mrb[16].mxu0 %v2186_v53  ;;  %708 = vmatmul.mubr.bf16.gmra.mrb[16].mxu1 %v2186_v53 }
  0x6f   : > { %604 = vmatprep.mubr.bf16.mxu0 %v2393_v0  ;;  %717 = vmatprep.mubr.bf16.mxu1 %v2393_v0 }
  0x76   : > { %605 = vmatmul.mubr.bf16.gmra.mrb[20].mxu0 %v2187_v54  ;;  %718 = vmatmul.mubr.bf16.gmra.mrb[20].mxu1 %v2187_v54 }
  0x77   : > { %614 = vmatprep.mubr.bf16.mxu0 %v2393_v0  ;;  %727 = vmatprep.mubr.bf16.mxu1 %v2393_v0 }
  0x7e   : > { %615 = vmatmul.mubr.bf16.gmra.mrb[24].mxu0 %v2188_v55  ;;  %728 = vmatmul.mubr.bf16.gmra.mrb[24].mxu1 %v2188_v55 }
  0x7f   : > { %624 = vmatprep.mubr.bf16.mxu0 %v2393_v0  ;;  %737 = vmatprep.mubr.bf16.mxu1 %v2393_v0  ;;  %v2213_v0 = vld [vmem:[%s3468_s3 + $0xa8] sm:$0xff]  }
  0x80   : > { %2059 = vmatpush3.bf16.msra.mxu1 %v2213_v0 }
  0x81   : > { %2060 = vmatprep.subr.bf16.mxu1 %v2216_v3 }
  0x84   : > { %2061 = vmatpush3.bf16.msra.mxu1 %v2217_v4 }
  0x85   : > { %2062 = vmatprep.subr.bf16.mxu1 %v2220_v6 }
  0x86   : > { %625 = vmatmul.mubr.bf16.gmra.mrb[28].mxu0 %v2189_v56  ;;  %738 = vmatmul.mubr.bf16.gmra.mrb[28].mxu1 %v2189_v56 }
  0x88   : > { %2063 = vmatpush3.bf16.msra.mxu1 %v2221_v8 }
 0x121   : > { %v556_v20 = vpop.f32.mrb[0].mxu0  ;;  %v669_v21 = vpop.f32.mrb[0].mxu1 }
 0x122   : > { %v557_v22 = vadd.f32 %v556_v20, %v2605_v16  ;;  %v670_v23 = vadd.f32 %v669_v21, %v2607_v17  ;;  %v558_v24 = vpop.f32.mrb[1].mxu0  ;;  %v671_v25 = vpop.f32.mrb[1].mxu1 }
 0x123   : > { %v2616_v26 = vadd.f32 %v558_v24, %v2609_v18  ;;  %v2619_v27 = vadd.f32 %v671_v25, %v2611_v19  ;;  %v560_v28 = vpop.f32.mrb[2].mxu0  ;;  %v673_v29 = vpop.f32.mrb[2].mxu1 }
 0x124   : > { %v812_v30 = vmul.f32 0.044715, %v557_v22  ;;  %v814_v31 = vmul.f32 0.044715, %v670_v23  ;;  %v561_v32 = vadd.f32 %v560_v28, %v2605_v16  ;;  %v674_v33 = vadd.f32 %v673_v29, %v2607_v17  ;;  %v562_v34 = vpop.f32.mrb[3].mxu0  ;;  %v675_v35 = vpop.f32.mrb[3].mxu1 }
 0x125   : > { %v813_v38 = vmul.f32 0.044715, %v2616_v26  ;;  %v815_v39 = vmul.f32 0.044715, %v2619_v27  ;;  %v2626_v44 = vadd.f32 %v562_v34, %v2609_v18  ;;  %v2629_v46 = vadd.f32 %v675_v35, %v2611_v19 }
 0x126   : > { %v876_v36 = vmul.f32 %v812_v30, %v557_v22  ;;  %v878_v37 = vmul.f32 %v814_v31, %v670_v23  ;;  %v816_v40 = vmul.f32 0.044715, %v561_v32  ;;  %v818_v43 = vmul.f32 0.044715, %v674_v33 }
 0x127   : > { %v877_v50 = vmul.f32 %v813_v38, %v2616_v26  ;;  %v879_v54 = vmul.f32 %v815_v39, %v2619_v27  ;;  %v2639_v60 = vmul.f32 0.5, %v557_v22  ;;  %v817_v63 = vmul.f32 0.044715, %v2626_v44 }
 0x128   : > { %v940_v41 = vmul.f32 %v876_v36, %v557_v22  ;;  %v942_v42 = vmul.f32 %v878_v37, %v670_v23  ;;  %v880_v45 = vmul.f32 %v816_v40, %v561_v32  ;;  %v882_v51 = vmul.f32 %v818_v43, %v674_v33 }
 0x129   : > { %v566_v47 = vpop.f32.mrb[4].mxu0  ;;  %v679_v48 = vpop.f32.mrb[4].mxu1  ;;  %v2642_v3 = vmul.f32 0.5, %v670_v23  ;;  %v819_v5 = vmul.f32 0.044715, %v2629_v46  ;;  %v2651_v10 = vmul.f32 %v877_v50, %v2616_v26  ;;  %v2654_v11 = vmul.f32 %v879_v54, %v2619_v27 }
 0x12a   : > { %v1004_v49 = vadd.f32 %v940_v41, %v557_v22  ;;  %v568_v52 = vpop.f32.mrb[5].mxu0  ;;  %v681_v53 = vpop.f32.mrb[5].mxu1  ;;  %v944_v55 = vmul.f32 %v880_v45, %v561_v32  ;;  %v2634_v56 = vadd.f32 %v566_v47, %v2605_v16  ;;  %v2637_v57 = vadd.f32 %v679_v48, %v2607_v17 }
 0x12b   : > { %v570_v58 = vpop.f32.mrb[6].mxu0  ;;  %v683_v59 = vpop.f32.mrb[6].mxu1  ;;  %v1006_v61 = vadd.f32 %v942_v42, %v670_v23  ;;  %v946_v62 = vmul.f32 %v882_v51, %v674_v33  ;;  %v2648_v9 = vadd.f32 %v568_v52, %v2609_v18  ;;  %v2656_v12 = vmul.f32 0.5, %v561_v32 }
 0x12c   : > { %3541 = vst [vmem:[#allocation5_spill] sm:$0xff] %v2634_v56  ;;  %3542 = vst [vmem:[#allocation6_spill] sm:$0xff] %v2637_v57  ;;  %v572_v0 = vpop.f32.mrb[7].mxu0  ;;  %v685_v1 = vpop.f32.mrb[7].mxu1  ;;  %v1068_v2 = vmul.f32 0.7978846, %v1004_v49  ;;  %v1008_v4 = vadd.f32 %v944_v55, %v561_v32  ;;  %v881_v15 = vmul.f32 %v817_v63, %v2626_v44  ;;  %v2662_v20 = vadd.f32 %v681_v53, %v2611_v19 }
 0x12d   : > { %v1010_v6 = vadd.f32 %v946_v62, %v674_v33  ;;  %v820_v7 = vmul.f32 0.044715, %v2634_v56  ;;  %v822_v8 = vmul.f32 0.044715, %v2637_v57  ;;  %v2658_v13 = vmul.f32 0.5, %v674_v33 }
 0x12e   : > { %v1070_v14 = vmul.f32 0.7978846, %v1006_v61  ;;  %3543 = vst [vmem:[#allocation7_spill] sm:$0xff] %v2662_v20  ;;  %v2665_v21 = vadd.f32 %v570_v58, %v2605_v16  ;;  %v1072_v22 = vmul.f32 0.7978846, %v1008_v4  ;;  %v883_v23 = vmul.f32 %v819_v5, %v2629_v46 }
 0x12f   : > { %v821_v24 = vmul.f32 0.044715, %v2648_v9  ;;  %v2670_v25 = vadd.f32 %v683_v59, %v2607_v17  ;;  %2222 = vtanh.f32 %v1068_v2  ;;  %v1074_v30 = vmul.f32 0.7978846, %v1010_v6 }
 0x130   : > { %3544 = vst [vmem:[#allocation8_spill] sm:$0xff] %v2665_v21  ;;  %v884_v31 = vmul.f32 %v820_v7, %v2634_v56  ;;  %v886_v32 = vmul.f32 %v822_v8, %v2637_v57  ;;  %v823_v35 = vmul.f32 0.044715, %v2662_v20  ;;  %v2676_v36 = vadd.f32 %v572_v0, %v2609_v18 }
 0x131   : > { %3545 = vst [vmem:[#allocation9_spill] sm:$0xff] %v2670_v25  ;;  %v576_v28 = vpop.f32.mrb[8].mxu0  ;;  %v689_v29 = vpop.f32.mrb[8].mxu1  ;;  %v2679_v37 = vadd.f32 %v685_v1, %v2611_v19  ;;  %2224 = vtanh.f32 %v1070_v14  ;;  %v824_v41 = vmul.f32 0.044715, %v2665_v21  ;;  %v2690_v48 = vmul.f32 %v881_v15, %v2626_v44 }
 0x132   : > { %v578_v33 = vpop.f32.mrb[9].mxu0  ;;  %v691_v34 = vpop.f32.mrb[9].mxu1  ;;  %v2682_v38 = vadd.f32 %v576_v28, %v2605_v16  ;;  %v826_v42 = vmul.f32 0.044715, %v2670_v25  ;;  %v2687_v43 = vadd.f32 %v689_v29, %v2607_v17  ;;  %2226 = vtanh.f32 %v1072_v22 }
 0x133   : > { %3546 = vst [vmem:[#allocation10_spill] sm:$0xff] %v2679_v37  ;;  %v580_v39 = vpop.f32.mrb[10].mxu0  ;;  %v693_v40 = vpop.f32.mrb[10].mxu1  ;;  %v885_v49 = vmul.f32 %v821_v24, %v2648_v9  ;;  %v825_v50 = vmul.f32 0.044715, %v2676_v36  ;;  %v2698_v54 = vadd.f32 %v578_v33, %v2609_v18  ;;  %2228 = vtanh.f32 %v1074_v30 }
 0x134   : > { %3547 = vst [vmem:[#allocation11_spill] sm:$0xff] %v2682_v38  ;;  %3548 = vst [vmem:[#allocation12_spill] sm:$0xff] %v2687_v43  ;;  %v582_v45 = vpop.f32.mrb[11].mxu0  ;;  %v695_v47 = vpop.f32.mrb[11].mxu1  ;;  %v827_v51 = vmul.f32 0.044715, %v2679_v37  ;;  %v2701_v55 = vmul.f32 %v883_v23, %v2629_v46  ;;  %v2704_v58 = vmul.f32 %v884_v31, %v2634_v56  ;;  %v2707_v59 = vmul.f32 %v886_v32, %v2637_v57 }
 0x135   : > { %v828_v52 = vmul.f32 0.044715, %v2682_v38  ;;  %v830_v53 = vmul.f32 0.044715, %v2687_v43  ;;  %3549 = vst [vmem:[#allocation13_spill] sm:$0xff] %v2698_v54  ;;  %v887_v61 = vmul.f32 %v823_v35, %v2662_v20  ;;  %v888_v62 = vmul.f32 %v824_v41, %v2665_v21 }
 0x136   : > { %3550 = vst [vmem:[#allocation14_spill] sm:$0xff] %v2704_v58  ;;  %3551 = vst [vmem:[#allocation15_spill] sm:$0xff] %v2707_v59  ;;  %v890_v63 = vmul.f32 %v826_v42, %v2670_v25  ;;  %v829_v0 = vmul.f32 0.044715, %v2698_v54  ;;  %v889_v1 = vmul.f32 %v825_v50, %v2676_v36  ;;  %v2715_v2 = vadd.f32 %v691_v34, %v2611_v19 }
 0x137   : > { %v2718_v4 = vadd.f32 %v580_v39, %v2605_v16  ;;  %v2721_v5 = vadd.f32 %v693_v40, %v2607_v17  ;;  %v2724_v8 = vmul.f32 %v885_v49, %v2648_v9  ;;  %v891_v14 = vmul.f32 %v827_v51, %v2679_v37 }
 0x138   : > { %3552 = vst [vmem:[#allocation16_spill] sm:$0xff] %v2715_v2  ;;  %v892_v15 = vmul.f32 %v828_v52, %v2682_v38  ;;  %v894_v22 = vmul.f32 %v830_v53, %v2687_v43  ;;  %v893_v28 = vmul.f32 %v829_v0, %v2698_v54  ;;  %v2731_v29 = vadd.f32 %v582_v45, %v2609_v18 }
 0x139   : > { %v586_v6 = vpop.f32.mrb[12].mxu0  ;;  %v699_v7 = vpop.f32.mrb[12].mxu1  ;;  %v2734_v30 = vadd.f32 %v695_v47, %v2611_v19  ;;  %v2742_v35 = vmul.f32 %v887_v61, %v2662_v20  ;;  %v2745_v39 = vmul.f32 %v888_v62, %v2665_v21  ;;  %v2748_v40 = vmul.f32 %v890_v63, %v2670_v25 }
 0x13a   : > { %v588_v23 = vpop.f32.mrb[13].mxu0  ;;  %v701_v24 = vpop.f32.mrb[13].mxu1  ;;  %v2737_v31 = vadd.f32 %v586_v6, %v2605_v16  ;;  %v2751_v41 = vadd.f32 %v699_v7, %v2607_v17  ;;  %v2754_v47 = vmul.f32 %v889_v1, %v2676_v36  ;;  %v831_v49 = vmul.f32 0.044715, %v2715_v2 }
 0x13b   : > { %v590_v32 = vpop.f32.mrb[14].mxu0  ;;  %v703_v33 = vpop.f32.mrb[14].mxu1  ;;  %3554 = vst [vmem:[#allocation18_spill] sm:$0xff] %v2742_v35  ;;  %3555 = vst [vmem:[#allocation19_spill] sm:$0xff] %v2745_v39  ;;  %v832_v50 = vmul.f32 0.044715, %v2718_v4  ;;  %v2762_v53 = vmul.f32 %v891_v14, %v2679_v37  ;;  %v2767_v63 = vadd.f32 %v588_v23, %v2609_v18  ;;  %v2772_v1 = vmul.f32 %v892_v15, %v2682_v38 }
 0x13c   : > { %3553 = vst [vmem:[#allocation17_spill] sm:$0xff] %v2737_v31  ;;  %v2739_v34 = vpop.eup %2222  ;;  %3556 = vst [vmem:[#allocation20_spill] sm:$0xff] %v2748_v40  ;;  %v592_v42 = vpop.f32.mrb[15].mxu0  ;;  %v834_v51 = vmul.f32 0.044715, %v2721_v5  ;;  %v2775_v6 = vmul.f32 %v894_v22, %v2687_v43  ;;  %v2778_v7 = vmul.f32 %v893_v28, %v2698_v54  ;;  %v2784_v23 = vadd.f32 %v701_v24, %v2611_v19 }
 0x13d   : > { %3557 = vst [vmem:[#allocation21_spill] sm:$0xff] %v2751_v41  ;;  %v705_v45 = vpop.f32.mrb[15].mxu1  ;;  %3558 = vst [vmem:[#allocation22_spill] sm:$0xff] %v2754_v47  ;;  %v2759_v52 = vpop.eup %2224  ;;  %v833_v61 = vmul.f32 0.044715, %v2731_v29  ;;  %v2787_v59 = vadd.f32 %v590_v32, %v2605_v16  ;;  %v895_v22 = vmul.f32 %v831_v49, %v2715_v2  ;;  %v2795_v43 = vadd.f32 %v703_v33, %v2607_v17 }
 0x13e   : > { %3559 = vst [vmem:[#allocation23_spill] sm:$0xff] %v2762_v53  ;;  %v835_v62 = vmul.f32 0.044715, %v2734_v30  ;;  %3560 = vst [vmem:[#allocation24_spill] sm:$0xff] %v2767_v63  ;;  %v2769_v0 = vpop.eup %2226  ;;  %v836_v14 = vmul.f32 0.044715, %v2737_v31  ;;  %v898_v28 = vmul.f32 %v834_v51, %v2721_v5  ;;  %v2806_v33 = vadd.f32 %v705_v45, %v2611_v19 }
 0x13f   : > { %3561 = vst [vmem:[#allocation25_spill] sm:$0xff] %v2772_v1  ;;  %3562 = vst [vmem:[#allocation26_spill] sm:$0xff] %v2775_v6  ;;  %v838_v40 = vmul.f32 0.044715, %v2751_v41  ;;  %v837_v25 = vmul.f32 0.044715, %v2767_v63  ;;  %v2789_v15 = vpop.eup %2228  ;;  %v896_v6 = vmul.f32 %v832_v50, %v2718_v4  ;;  %v2803_v50 = vadd.f32 %v592_v42, %v2609_v18 }
 0x140   : > { %3563 = vst [vmem:[#allocation27_spill] sm:$0xff] %v2778_v7  ;;  %3564 = vst [vmem:[#allocation28_spill] sm:$0xff] %v2784_v23  ;;  %v897_v7 = vmul.f32 %v833_v61, %v2731_v29  ;;  %v899_v24 = vmul.f32 %v835_v62, %v2734_v30  ;;  %v839_v32 = vmul.f32 0.044715, %v2784_v23  ;;  %v840_v54 = vmul.f32 0.044715, %v2787_v59 }
 0x141   : > { %3565 = vst [vmem:[#allocation29_spill] sm:$0xff] %v2787_v59  ;;  %3566 = vst [vmem:[#allocation30_spill] sm:$0xff] %v2795_v43  ;;  %v596_v1 = vpop.f32.mrb[16].mxu0  ;;  %v709_v38 = vpop.f32.mrb[16].mxu1  ;;  %v842_v49 = vmul.f32 0.044715, %v2795_v43  ;;  %v900_v62 = vmul.f32 %v836_v14, %v2737_v31  ;;  %v902_v58 = vmul.f32 %v838_v40, %v2751_v41  ;;  %v901_v56 = vmul.f32 %v837_v25, %v2767_v63 }
 0x142   : > { %v598_v57 = vpop.f32.mrb[17].mxu0  ;;  %v711_v39 = vpop.f32.mrb[17].mxu1  ;;  %3567 = vst [vmem:[#allocation31_spill] sm:$0xff] %v2803_v50  ;;  %3568 = vst [vmem:[#allocation32_spill] sm:$0xff] %v2806_v33  ;;  %v2809_v51 = vadd.f32 %v596_v1, %v2605_v16  ;;  %v2815_v53 = vadd.f32 %v709_v38, %v2607_v17  ;;  %v903_v45 = vmul.f32 %v839_v32, %v2784_v23  ;;  %v841_v20 = vmul.f32 0.044715, %v2803_v50 }
 0x143   : > { %v600_v61 = vpop.f32.mrb[18].mxu0  ;;  %v713_v21 = vpop.f32.mrb[18].mxu1  ;;  %v904_v1 = vmul.f32 %v840_v54, %v2787_v59  ;;  %v906_v35 = vmul.f32 %v842_v49, %v2795_v43  ;;  %v2826_v14 = vmul.f32 %v895_v22, %v2715_v2  ;;  %v843_v25 = vmul.f32 0.044715, %v2806_v33 }
 0x144   : > { %3569 = vst [vmem:[#allocation33_spill] sm:$0xff] %v2809_v51  ;;  %3570 = vst [vmem:[#allocation34_spill] sm:$0xff] %v2815_v53  ;;  %v2817_v37 = vpop.f32.mrb[19].mxu0  ;;  %v2819_v42 = vpop.f32.mrb[19].mxu1  ;;  %v844_v38 = vmul.f32 0.044715, %v2809_v51  ;;  %v2832_v47 = vmul.f32 %v896_v6, %v2718_v4  ;;  %v2835_v32 = vmul.f32 %v898_v28, %v2721_v5  ;;  %v2838_v54 = vmul.f32 %v897_v7, %v2731_v29 }
 0x145   : > { %3571 = vst [vmem:[#allocation35_spill] sm:$0xff] %v2826_v14  ;;  %v846_v40 = vmul.f32 0.044715, %v2815_v53  ;;  %v2841_v49 = vadd.f32 %v598_v57, %v2609_v18  ;;  %v2844_v22 = vmul.f32 %v899_v24, %v2734_v30  ;;  %v2847_v14 = vmul.f32 %v900_v62, %v2737_v31 }
 0x146   : > { %3572 = vst [vmem:[#allocation36_spill] sm:$0xff] %v2835_v32  ;;  %v2850_v2 = vmul.f32 %v902_v58, %v2751_v41  ;;  %v905_v6 = vmul.f32 %v841_v20, %v2803_v50  ;;  %v2854_v28 = vmul.f32 %v901_v56, %v2767_v63  ;;  %v2857_v7 = vmul.f32 %v903_v45, %v2784_v23 }
 0x147   : > { %3573 = vst [vmem:[#allocation37_spill] sm:$0xff] %v2841_v49  ;;  %3574 = vst [vmem:[#allocation38_spill] sm:$0xff] %v2847_v14  ;;  %v2860_v57 = vmul.f32 %v904_v1, %v2787_v59  ;;  %v2863_v24 = vmul.f32 %v906_v35, %v2795_v43  ;;  %v907_v14 = vmul.f32 %v843_v25, %v2806_v33  ;;  %v845_v1 = vmul.f32 0.044715, %v2841_v49 }
 0x148   : > { %3575 = vst [vmem:[#allocation39_spill] sm:$0xff] %v2850_v2  ;;  %3576 = vst [vmem:[#allocation40_spill] sm:$0xff] %v2854_v28  ;;  %v908_v58 = vmul.f32 %v844_v38, %v2809_v51  ;;  %v910_v20 = vmul.f32 %v846_v40, %v2815_v53  ;;  %v1005_v56 = vadd.f32 %v2651_v10, %v2616_v26 }
 0x149   : > { %3577 = vst [vmem:[#allocation41_spill] sm:$0xff] %v2857_v7  ;;  %3578 = vst [vmem:[#allocation42_spill] sm:$0xff] %v2860_v57  ;;  %v606_v32 = vpop.f32.mrb[20].mxu0  ;;  %v719_v62 = vpop.f32.mrb[20].mxu1  ;;  %v2874_v41 = vadd.f32 %v711_v39, %v2611_v19  ;;  %v1009_v35 = vadd.f32 %v2690_v48, %v2626_v44  ;;  %v1007_v25 = vadd.f32 %v2654_v11, %v2619_v27 }
 0x14a   : > { %3579 = vst [vmem:[#allocation43_spill] sm:$0xff] %v2863_v24  ;;  %v608_v2 = vpop.f32.mrb[21].mxu0  ;;  %v2870_v45 = vpop.f32.mrb[21].mxu1  ;;  %v2885_v10 = vmul.f32 %v905_v6, %v2803_v50  ;;  %v2888_v24 = vmul.f32 0.5, %v2616_v26  ;;  %v1069_v43 = vmul.f32 0.7978846, %v1005_v56  ;;  %v1011_v39 = vadd.f32 %v2701_v55, %v2629_v46 }
 0x14b   : > { %3580 = vst [vmem:[#allocation44_spill] sm:$0xff] %v2874_v41  ;;  %v2880_v38 = vpop.f32.mrb[22].mxu0  ;;  %v2882_v40 = vpop.f32.mrb[22].mxu1  ;;  %v1073_v59 = vmul.f32 0.7978846, %v1009_v35  ;;  %v2897_v31 = vadd.f32 %v600_v61, %v2605_v16  ;;  %v2900_v7 = vadd.f32 %v713_v21, %v2607_v17  ;;  %v2903_v6 = vmul.f32 %v907_v14, %v2806_v33 }
 0x14c   : > { %3581 = vst [vmem:[#allocation45_spill] sm:$0xff] %v2885_v10  ;;  %v2892_v57 = vpop.f32.mrb[23].mxu0  ;;  %v2894_v48 = vpop.f32.mrb[23].mxu1  ;;  %v1071_v11 = vmul.f32 0.7978846, %v1007_v25  ;;  %2230 = vtanh.f32 %v1069_v43  ;;  %v1196_v56 = vadd.f32 1.0, %v2739_v34  ;;  %v909_v14 = vmul.f32 %v845_v1, %v2841_v49 }
 0x14d   : > { %3582 = vst [vmem:[#allocation46_spill] sm:$0xff] %v2897_v31  ;;  %3583 = vst [vmem:[#allocation47_spill] sm:$0xff] %v2900_v7  ;;  %v1075_v26 = vmul.f32 0.7978846, %v1011_v39  ;;  %v847_v55 = vmul.f32 0.044715, %v2874_v41  ;;  %2232 = vtanh.f32 %v1073_v59 }
 0x14e   : > { %3584 = vst [vmem:[#allocation48_spill] sm:$0xff] %v2903_v6  ;;  %v848_v23 = vmul.f32 0.044715, %v2897_v31  ;;  %v1200_v35 = vadd.f32 1.0, %v2769_v0  ;;  %2234 = vtanh.f32 %v1071_v11  ;;  %v850_v61 = vmul.f32 0.044715, %v2900_v7 }
 0x14f   : > { %v1198_v21 = vadd.f32 1.0, %v2759_v52  ;;  %v1202_v25 = vadd.f32 1.0, %v2789_v15  ;;  %2236 = vtanh.f32 %v1075_v26  ;;  %v2914_v43 = vmul.f32 %v1196_v56, %v2639_v60 }
 0x150   : > { %v2917_v34 = vmul.f32 %v1200_v35, %v2656_v12  ;;  %v2931_v15 = vadd.f32 %v2817_v37, %v2609_v18  ;;  %v2935_v60 = vadd.f32 %v2819_v42, %v2611_v19  ;;  %v2942_v11 = vmul.f32 %v908_v58, %v2809_v51 }
 0x151   : > { %v2919_v59 = vpop.f32.mrb[24].mxu0  ;;  %v2921_v39 = vpop.f32.mrb[24].mxu1  ;;  %v2924_v0 = vmul.f32 %v1198_v21, %v2642_v3  ;;  %v2927_v52 = vmul.f32 %v1202_v25, %v2658_v13  ;;  %v911_v3 = vmul.f32 %v847_v55, %v2874_v41  ;;  %v2948_v26 = vadd.f32 %v606_v32, %v2605_v16 }
 0x152   : > { %v2937_v12 = vpop.f32.mrb[25].mxu0  ;;  %v2939_v1 = vpop.f32.mrb[25].mxu1  ;;  %3585 = vst [vmem:[#allocation49_spill] sm:$0xff] %v2942_v11  ;;  %v912_v42 = vmul.f32 %v848_v23, %v2897_v31  ;;  %v914_v35 = vmul.f32 %v850_v61, %v2900_v7  ;;  %v2959_v21 = vadd.f32 %v719_v62, %v2607_v17  ;;  %v2966_v32 = vmul.f32 %v910_v20, %v2815_v53 }
 0x153   : > { %3586 = vst [vmem:[#allocation50_spill] sm:$0xff] %v2948_v26  ;;  %v2950_v37 = vpop.f32.mrb[26].mxu0  ;;  %v2952_v56 = vpop.f32.mrb[26].mxu1  ;;  %v753_v13 = vmul.f32 0.5, %v2626_v44  ;;  %v849_v11 = vmul.f32 0.044715, %v2931_v15  ;;  %v2971_v23 = vadd.f32 %v608_v2, %v2609_v18  ;;  %v2974_v61 = vmul.f32 %v909_v14, %v2841_v49 }
 0x154   : > { %3587 = vst [vmem:[#allocation51_spill] sm:$0xff] %v2959_v21  ;;  %v2961_v55 = vpop.f32.mrb[27].mxu0  ;;  %v2963_v25 = vpop.f32.mrb[27].mxu1  ;;  %3588 = vst [vmem:[#allocation52_spill] sm:$0xff] %v2966_v32  ;;  %v751_v62 = vmul.f32 0.5, %v2619_v27  ;;  %v755_v58 = vmul.f32 0.5, %v2629_v46  ;;  %v2980_v6 = vmul.f32 %v911_v3, %v2874_v41  ;;  %v2985_v44 = vadd.f32 %v2870_v45, %v2611_v19 }
 0x155   : > { %3589 = vst [vmem:[#allocation53_spill] sm:$0xff] %v2974_v61  ;;  %v851_v51 = vmul.f32 0.044715, %v2935_v60  ;;  %v852_v20 = vmul.f32 0.044715, %v2948_v26  ;;  %v1013_v2 = vadd.f32 %v2724_v8, %v2648_v9  ;;  %v2990_v32 = vmul.f32 %v912_v42, %v2897_v31  ;;  %v3593_v3 = vld [vmem:[#allocation22_spill] sm:$0xff] }
 0x156   : > { %3590 = vst [vmem:[#allocation54_spill] sm:$0xff] %v2980_v6  ;;  %v2231_v14 = vpop.eup %2230  ;;  %v2993_v27 = vmul.f32 %v914_v35, %v2900_v7  ;;  %v854_v46 = vmul.f32 0.044715, %v2959_v21  ;;  %v1017_v53 = vadd.f32 %v3593_v3, %v2676_v36  ;;  %v913_v45 = vmul.f32 %v849_v11, %v2931_v15 }
 0x157   : > { %3591 = vst [vmem:[#allocation55_spill] sm:$0xff] %v2990_v32  ;;  %v2233_v6 = vpop.eup %2232  ;;  %v1197_v41 = vadd.f32 1.0, %v2231_v14  ;;  %v853_v61 = vmul.f32 0.044715, %v2971_v23  ;;  %v3001_v8 = vmul.f32 0.5, %v2648_v9  ;;  %v915_v7 = vmul.f32 %v851_v51, %v2935_v60 }
 0x158   : > { %3592 = vst [vmem:[#allocation56_spill] sm:$0xff] %v2993_v27  ;;  %v2235_v35 = vpop.eup %2234  ;;  %v1201_v27 = vadd.f32 1.0, %v2233_v6  ;;  %v1077_v32 = vmul.f32 0.7978846, %v1013_v2  ;;  %v1081_v31 = vmul.f32 0.7978846, %v1017_v53  ;;  %v916_v11 = vmul.f32 %v852_v20, %v2948_v26 }
 0x159   : > { %v3003_v49 = vpop.f32.mrb[28].mxu0  ;;  %v3005_v42 = vpop.f32.mrb[28].mxu1  ;;  %v1199_v33 = vadd.f32 1.0, %v2235_v35  ;;  %v855_v10 = vmul.f32 0.044715, %v2985_v44  ;;  %v3013_v9 = vmul.f32 0.5, %v2676_v36  ;;  %v1261_v6 = vmul.f32 %v1197_v41, %v2888_v24 }
 0x15a   : > { %3594 = vst [vmem:[#allocation22_spill] sm:$0xff] %v3003_v49  ;;  %3595 = vst [vmem:[#allocation57_spill] sm:$0xff] %v3005_v42  ;;  %v3008_v3 = vpop.f32.mrb[29].mxu0  ;;  %v2237_v14 = vpop.eup %2236  ;;  %v1265_v51 = vmul.f32 %v1201_v27, %v753_v13  ;;  %2238 = vtanh.f32 %v1077_v32  ;;  %v918_v20 = vmul.f32 %v854_v46, %v2959_v21  ;;  %v917_v35 = vmul.f32 %v853_v61, %v2971_v23  ;;  %v3599_v36 = vld [vmem:[#allocation7_spill] sm:$0xff]  ;;  %v3601_v24 = vld [vmem:[#allocation10_spill] sm:$0xff] }
 0x15b   : > { %3596 = vst [vmem:[#allocation58_spill] sm:$0xff] %v3008_v3  ;;  %v3015_v50 = vpop.f32.mrb[29].mxu1  ;;  %v3017_v28 = vpop.f32.mrb[30].mxu0  ;;  %v1203_v2 = vadd.f32 1.0, %v2237_v14  ;;  %2240 = vtanh.f32 %v1081_v31  ;;  %v3600_v3 = vld [vmem:[#allocation18_spill] sm:$0xff]  ;;  %v1263_v49 = vmul.f32 %v1199_v33, %v751_v62  ;;  %v3602_v13 = vld [vmem:[#allocation23_spill] sm:$0xff]  ;;  %v3033_v27 = vmul.f32 %v913_v45, %v2931_v15 }
 0x15c   : > { %3597 = vst [vmem:[#allocation59_spill] sm:$0xff] %v3015_v50  ;;  %3598 = vst [vmem:[#allocation60_spill] sm:$0xff] %v3017_v28  ;;  %v3020_v53 = vpop.f32.mrb[30].mxu1  ;;  %v3022_v63 = vpop.f32.mrb[31].mxu0  ;;  %v1015_v42 = vadd.f32 %v3600_v3, %v3599_v36  ;;  %v1325_v28 = vpack.c.bf16 %v1265_v51, %v1261_v6  ;;  %v1019_v32 = vadd.f32 %v3602_v13, %v3601_v24  ;;  %v3606_v62 = vld [vmem:[#allocation14_spill] sm:$0xff] }
 0x15d   : > { %v3028_v50 = vpop.f32.mrb[31].mxu1  ;;  %v1267_v41 = vmul.f32 %v1203_v2, %v755_v58  ;;  %v3036_v14 = vmul.f32 %v915_v7, %v2935_v60  ;;  %v3040_v31 = vadd.f32 %v2880_v38, %v2605_v16  ;;  %v3044_v33 = vadd.f32 %v2882_v40, %v2607_v17  ;;  %v3605_v58 = vld [vmem:[#allocation5_spill] sm:$0xff] }
 0x15e   : > { %v1079_v46 = vmul.f32 0.7978846, %v1015_v42  ;;  %1651 = vmatprep.mubr.bf16.mxu0 %v1325_v28  ;;  %v1083_v3 = vmul.f32 0.7978846, %v1019_v32  ;;  %v1012_v6 = vadd.f32 %v3606_v62, %v3605_v58  ;;  %v3607_v45 = vpack.c.bf16 %v2917_v34, %v2914_v43  ;;  %v3609_v28 = vld [vmem:[#allocation8_spill] sm:$0xff]  ;;  %v3615_v32 = vld [vmem:[#allocation9_spill] sm:$0xff] }
 0x15f   : > { %3603 = vst [vmem:[#allocation7_spill] sm:$0xff] %v3040_v31  ;;  %v1327_v61 = vpack.c.bf16 %v1267_v41, %v1263_v49  ;;  %3604 = vst [vmem:[#allocation18_spill] sm:$0xff] %v3044_v33  ;;  %v3052_v7 = vmul.f32 %v916_v11, %v2948_v26  ;;  %v919_v38 = vmul.f32 %v855_v10, %v2985_v44  ;;  %v3610_v49 = vld [vmem:[#allocation19_spill] sm:$0xff]  ;;  %v856_v34 = vmul.f32 0.044715, %v3040_v31  ;;  %v3613_v11 = vld [vmem:[#allocation6_spill] sm:$0xff] }
 0x160   : > { %1652 = vmatmul.mubr.bf16.vlgmr.msra.gmra.mrb[32].mxu0 %v3607_v45  ;;  %2242 = vtanh.f32 %v1079_v46  ;;  %v1016_v42 = vadd.f32 %v3610_v49, %v3609_v28  ;;  %v3058_v40 = vmul.f32 %v918_v20, %v2959_v21  ;;  %v3061_v51 = vmul.f32 %v917_v35, %v2971_v23  ;;  %v3614_v41 = vld [vmem:[#allocation15_spill] sm:$0xff]  ;;  %v3616_v46 = vld [vmem:[#allocation20_spill] sm:$0xff] }
 0x161   : > { %3608 = vst [vmem:[#allocation10_spill] sm:$0xff] %v3052_v7  ;;  %1748 = vmatprep.mubr.bf16.mxu1 %v1327_v61  ;;  %2244 = vtanh.f32 %v1083_v3  ;;  %v1076_v2 = vmul.f32 0.7978846, %v1012_v6  ;;  %v3612_v43 = vpack.c.bf16 %v2927_v52, %v2924_v0  ;;  %v1014_v13 = vadd.f32 %v3614_v41, %v3613_v11 }
 0x162   : > { %3611 = vst [vmem:[#allocation23_spill] sm:$0xff] %v3058_v40  ;;  %v1080_v10 = vmul.f32 0.7978846, %v1016_v42  ;;  %v1018_v61 = vadd.f32 %v3616_v46, %v3615_v32  ;;  %v858_v20 = vmul.f32 0.044715, %v3044_v33  ;;  %v3074_v35 = vadd.f32 %v2892_v57, %v2609_v18 }
 0x163   : > { %1749 = vmatmul.mubr.bf16.vlgmr.msra.gmra.mrb[32].mxu1 %v3612_v43  ;;  %2246 = vtanh.f32 %v1076_v2  ;;  %v3078_v0 = vadd.f32 %v2894_v48, %v2611_v19  ;;  %v3081_v52 = vmul.f32 %v919_v38, %v2985_v44  ;;  %v1078_v3 = vmul.f32 0.7978846, %v1014_v13 }
 0x164   : > { %2248 = vtanh.f32 %v1080_v10  ;;  %v1082_v62 = vmul.f32 0.7978846, %v1018_v61  ;;  %v2239_v6 = vpop.eup %2238  ;;  %v759_v45 = vmul.f32 0.5, %v3599_v36  ;;  %v857_v49 = vmul.f32 0.044715, %v3074_v35 }
 0x165   : > { %v859_v42 = vmul.f32 0.044715, %v3078_v0  ;;  %v3088_v57 = vadd.f32 %v2919_v59, %v2605_v16  ;;  %v2241_v2 = vpop.eup %2240  ;;  %v1205_v48 = vadd.f32 1.0, %v2239_v6  ;;  %v763_v43 = vmul.f32 0.5, %v3601_v24 }
 0x166   : > { %2250 = vtanh.f32 %v1078_v3  ;;  %v3093_v38 = vadd.f32 %v2921_v39, %v2607_v17  ;;  %v1209_v10 = vadd.f32 1.0, %v2241_v2  ;;  %v920_v36 = vmul.f32 %v856_v34, %v3040_v31 }
 0x167   : > { %v922_v41 = vmul.f32 %v858_v20, %v3044_v33  ;;  %2252 = vtanh.f32 %v1082_v62  ;;  %v756_v13 = vmul.f32 0.5, %v3605_v58  ;;  %v921_v59 = vmul.f32 %v857_v49, %v3074_v35 }
 0x168   : > { %3617 = vst [vmem:[#allocation5_spill] sm:$0xff] %v3093_v38  ;;  %v923_v46 = vmul.f32 %v859_v42, %v3078_v0  ;;  %v3102_v24 = vadd.f32 %v2937_v12, %v2609_v18  ;;  %v1269_v61 = vmul.f32 %v1205_v48, %v3001_v8  ;;  %v1273_v39 = vmul.f32 %v1209_v10, %v3013_v9 }
 0x169   : > { %v860_v3 = vmul.f32 0.044715, %v3088_v57  ;;  %v3109_v34 = vadd.f32 %v2939_v1, %v2611_v19  ;;  %v760_v58 = vmul.f32 0.5, %v3609_v28  ;;  %v758_v62 = vmul.f32 0.5, %v3613_v11 }
 0x16a   : > { %v2243_v20 = vpop.eup %2242  ;;  %v762_v6 = vmul.f32 0.5, %v3615_v32  ;;  %v862_v12 = vmul.f32 0.044715, %v3093_v38  ;;  %v1329_v42 = vpack.c.bf16 %v1273_v39, %v1269_v61  ;;  %v3116_v9 = vmul.f32 %v920_v36, %v3040_v31  ;;  %v3621_v36 = vld [vmem:[#allocation13_spill] sm:$0xff]  ;;  %v3622_v39 = vld [vmem:[#allocation27_spill] sm:$0xff] }
 0x16b   : > { %v2245_v49 = vpop.eup %2244  ;;  %v1207_v8 = vadd.f32 1.0, %v2243_v20  ;;  %v3119_v2 = vmul.f32 %v922_v41, %v3044_v33  ;;  %v3122_v48 = vmul.f32 %v921_v59, %v3074_v35  ;;  %v3125_v28 = vmul.f32 %v923_v46, %v3078_v0  ;;  %v3624_v31 = vld [vmem:[#allocation35_spill] sm:$0xff] }
 0x16c   : > { %3618 = vst [vmem:[#allocation14_spill] sm:$0xff] %v3116_v9  ;;  %v1211_v1 = vadd.f32 1.0, %v2245_v49  ;;  %v861_v11 = vmul.f32 0.044715, %v3102_v24  ;;  %1659 = vmatprep.mubr.bf16.mxu0 %v1329_v42  ;;  %v924_v10 = vmul.f32 %v860_v3, %v3088_v57  ;;  %v863_v61 = vmul.f32 0.044715, %v3109_v34 }
 0x16d   : > { %3619 = vst [vmem:[#allocation8_spill] sm:$0xff] %v3119_v2  ;;  %3620 = vst [vmem:[#allocation19_spill] sm:$0xff] %v3125_v28  ;;  %v2247_v32 = vpop.eup %2246  ;;  %v1021_v20 = vadd.f32 %v3622_v39, %v3621_v36  ;;  %v1025_v41 = vadd.f32 %v2838_v54, %v2731_v29  ;;  %v1271_v59 = vmul.f32 %v1207_v8, %v759_v45  ;;  %v3623_v42 = vld [vmem:[#allocation16_spill] sm:$0xff] }
 0x16e   : > { %v2249_v49 = vpop.eup %2248  ;;  %v1275_v2 = vmul.f32 %v1211_v1, %v763_v43  ;;  %v1204_v33 = vadd.f32 1.0, %v2247_v32  ;;  %v926_v46 = vmul.f32 %v862_v12, %v3093_v38  ;;  %v1023_v3 = vadd.f32 %v3624_v31, %v3623_v42 }
 0x16f   : > { %v1208_v40 = vadd.f32 1.0, %v2249_v49  ;;  %v1085_v21 = vmul.f32 0.7978846, %v1021_v20  ;;  %v1089_v9 = vmul.f32 0.7978846, %v1025_v41  ;;  %v1027_v39 = vadd.f32 %v2844_v22, %v2734_v30  ;;  %v3630_v20 = vld [vmem:[#allocation12_spill] sm:$0xff] }
 0x170   : > { %v2251_v7 = vpop.eup %2250  ;;  %v1331_v26 = vpack.c.bf16 %v1275_v2, %v1271_v59  ;;  %v1268_v28 = vmul.f32 %v1204_v33, %v756_v13  ;;  %v3141_v54 = vadd.f32 %v2950_v37, %v2605_v16  ;;  %v1087_v12 = vmul.f32 0.7978846, %v1023_v3  ;;  %v3631_v41 = vld [vmem:[#allocation26_spill] sm:$0xff] }
 0x171   : > { %v2253_v45 = vpop.eup %2252  ;;  %v1272_v43 = vmul.f32 %v1208_v40, %v760_v58  ;;  %v1206_v8 = vadd.f32 1.0, %v2251_v7  ;;  %2254 = vtanh.f32 %v1085_v21  ;;  %v925_v32 = vmul.f32 %v861_v11, %v3102_v24  ;;  %v3627_v40 = vld [vmem:[#allocation11_spill] sm:$0xff]  ;;  %v3628_v58 = vld [vmem:[#allocation25_spill] sm:$0xff] }
 0x172   : > { %3625 = vst [vmem:[#allocation6_spill] sm:$0xff] %v3141_v54  ;;  %1756 = vmatprep.mubr.bf16.mxu1 %v1331_v26  ;;  %v1210_v1 = vadd.f32 1.0, %v2253_v45  ;;  %2256 = vtanh.f32 %v1089_v9  ;;  %v1091_v31 = vmul.f32 0.7978846, %v1027_v39  ;;  %v927_v33 = vmul.f32 %v863_v61, %v3109_v34 }
 0x173   : > { %v1328_v2 = vpack.c.bf16 %v1272_v43, %v1268_v28  ;;  %v765_v22 = vmul.f32 0.5, %v3621_v36  ;;  %2258 = vtanh.f32 %v1087_v12  ;;  %v1270_v13 = vmul.f32 %v1206_v8, %v758_v62  ;;  %v3633_v12 = vld [vmem:[#allocation22_spill] sm:$0xff] }
 0x174   : > { %v1274_v37 = vmul.f32 %v1210_v1, %v762_v6  ;;  %2260 = vtanh.f32 %v1091_v31  ;;  %v3148_v7 = vadd.f32 %v2952_v56, %v2607_v17  ;;  %v769_v26 = vmul.f32 0.5, %v2731_v29 }
 0x175   : > { %1660 = vmatmul.mubr.bf16.gmra.mrb[36].mxu0 %v1328_v2  ;;  %v864_v21 = vmul.f32 0.044715, %v3141_v54  ;;  %v1020_v9 = vadd.f32 %v3628_v58, %v3627_v40  ;;  %v1024_v28 = vadd.f32 %v2832_v47, %v2718_v4  ;;  %v3157_v62 = vmul.f32 %v924_v10, %v3088_v57  ;;  %v3632_v10 = vld [vmem:[#allocation36_spill] sm:$0xff] }
 0x176   : > { %3626 = vst [vmem:[#allocation15_spill] sm:$0xff] %v3148_v7  ;;  %v1330_v11 = vpack.c.bf16 %v1274_v37, %v1270_v13  ;;  %v3160_v6 = vmul.f32 %v926_v46, %v3093_v38  ;;  %v3163_v56 = vmul.f32 %v925_v32, %v3102_v24  ;;  %v3166_v29 = vmul.f32 %v927_v33, %v3109_v34  ;;  %v3634_v32 = vld [vmem:[#allocation57_spill] sm:$0xff] }
 0x177   : > { %v1084_v61 = vmul.f32 0.7978846, %v1020_v9  ;;  %v1088_v36 = vmul.f32 0.7978846, %v1024_v28  ;;  %v1022_v49 = vadd.f32 %v3631_v41, %v3630_v20  ;;  %v866_v47 = vmul.f32 0.044715, %v3148_v7 }
 0x178   : > { %3629 = vst [vmem:[#allocation9_spill] sm:$0xff] %v3160_v6  ;;  %1757 = vmatmul.mubr.bf16.gmra.mrb[36].mxu1 %v1330_v11  ;;  %v1026_v59 = vadd.f32 %v3632_v10, %v2721_v5  ;;  %v3175_v46 = vadd.f32 %v2961_v55, %v2609_v18  ;;  %v3179_v3 = vadd.f32 %v2963_v25, %v2611_v19  ;;  %v767_v39 = vmul.f32 0.5, %v3623_v42 }
 0x179   : > { %v928_v45 = vmul.f32 %v864_v21, %v3141_v54  ;;  %2262 = vtanh.f32 %v1084_v61  ;;  %v1086_v43 = vmul.f32 0.7978846, %v1022_v49  ;;  %v3185_v1 = vadd.f32 %v3633_v12, %v2605_v16  ;;  %v3636_v49 = vld [vmem:[#allocation58_spill] sm:$0xff]  ;;  %v3638_v12 = vld [vmem:[#allocation59_spill] sm:$0xff] }
 0x17a   : > { %2264 = vtanh.f32 %v1088_v36  ;;  %v1090_v8 = vmul.f32 0.7978846, %v1026_v59  ;;  %v3189_v55 = vadd.f32 %v3634_v32, %v2607_v17  ;;  %v771_v25 = vmul.f32 0.5, %v2734_v30 }
 0x17b   : > { %v2255_v31 = vpop.eup %2254  ;;  %v764_v2 = vmul.f32 0.5, %v3627_v40  ;;  %2266 = vtanh.f32 %v1086_v43  ;;  %v865_v42 = vmul.f32 0.044715, %v3175_v46  ;;  %v930_v37 = vmul.f32 %v866_v47, %v3148_v7 }
 0x17c   : > { %v2257_v33 = vpop.eup %2256  ;;  %v1213_v13 = vadd.f32 1.0, %v2255_v31  ;;  %2268 = vtanh.f32 %v1090_v8  ;;  %v867_v21 = vmul.f32 0.044715, %v3179_v3  ;;  %v3197_v28 = vmul.f32 %v928_v45, %v3141_v54 }
 0x17d   : > { %v2259_v58 = vpop.eup %2258  ;;  %v1217_v9 = vadd.f32 1.0, %v2257_v33  ;;  %v768_v11 = vmul.f32 0.5, %v2718_v4  ;;  %v766_v30 = vmul.f32 0.5, %v3630_v20  ;;  %v868_v36 = vmul.f32 0.044715, %v3185_v1 }
 0x17e   : > { %3635 = vst [vmem:[#allocation20_spill] sm:$0xff] %v3197_v28  ;;  %v2261_v40 = vpop.eup %2260  ;;  %v1215_v61 = vadd.f32 1.0, %v2259_v58  ;;  %v870_v41 = vmul.f32 0.044715, %v3189_v55  ;;  %v3205_v47 = vadd.f32 %v3636_v49, %v2609_v18  ;;  %v1277_v10 = vmul.f32 %v1213_v13, %v765_v22  ;;  %v3639_v49 = vld [vmem:[#allocation24_spill] sm:$0xff] }
 0x17f   : > { %v1281_v59 = vmul.f32 %v1217_v9, %v769_v26  ;;  %v1219_v43 = vadd.f32 1.0, %v2261_v40  ;;  %v929_v45 = vmul.f32 %v865_v42, %v3175_v46  ;;  %v3209_v8 = vmul.f32 %v930_v37, %v3148_v7  ;;  %v3640_v22 = vld [vmem:[#allocation40_spill] sm:$0xff]  ;;  %v3641_v9 = vld [vmem:[#allocation31_spill] sm:$0xff] }
 0x180   : > { %v770_v4 = vmul.f32 0.5, %v2721_v5  ;;  %v931_v20 = vmul.f32 %v867_v21, %v3179_v3  ;;  %v3215_v32 = vadd.f32 %v3638_v12, %v2611_v19  ;;  %v1279_v33 = vmul.f32 %v1215_v61, %v767_v39  ;;  %v3642_v5 = vld [vmem:[#allocation45_spill] sm:$0xff]  ;;  %v3646_v7 = vld [vmem:[#allocation48_spill] sm:$0xff] }
 0x181   : > { %3637 = vst [vmem:[#allocation13_spill] sm:$0xff] %v3209_v8  ;;  %v1333_v31 = vpack.c.bf16 %v1281_v59, %v1277_v10  ;;  %v1283_v58 = vmul.f32 %v1219_v43, %v771_v25  ;;  %v1029_v26 = vadd.f32 %v3640_v22, %v3639_v49  ;;  %v932_v13 = vmul.f32 %v868_v36, %v3185_v1  ;;  %v3643_v25 = vld [vmem:[#allocation28_spill] sm:$0xff]  ;;  %v3644_v61 = vld [vmem:[#allocation41_spill] sm:$0xff] }
 0x182   : > { %v934_v42 = vmul.f32 %v870_v41, %v3189_v55  ;;  %v869_v37 = vmul.f32 0.044715, %v3205_v47  ;;  %v1033_v40 = vadd.f32 %v3642_v5, %v3641_v9  ;;  %v3225_v12 = vmul.f32 %v929_v45, %v3175_v46  ;;  %v3645_v22 = vld [vmem:[#allocation32_spill] sm:$0xff] }
 0x183   : > { %v2263_v21 = vpop.eup %2262  ;;  %1667 = vmatprep.mubr.bf16.mxu0 %v1333_v31  ;;  %v1335_v8 = vpack.c.bf16 %v1283_v58, %v1279_v33  ;;  %v1093_v39 = vmul.f32 0.7978846, %v1029_v26  ;;  %v1031_v10 = vadd.f32 %v3644_v61, %v3643_v25  ;;  %v871_v36 = vmul.f32 0.044715, %v3215_v32 }
 0x184   : > { %v2265_v59 = vpop.eup %2264  ;;  %v1212_v43 = vadd.f32 1.0, %v2263_v21  ;;  %v1097_v41 = vmul.f32 0.7978846, %v1033_v40  ;;  %v1035_v6 = vadd.f32 %v3646_v7, %v3645_v22  ;;  %v3233_v31 = vmul.f32 %v931_v20, %v3179_v3  ;;  %v3647_v21 = vld [vmem:[#allocation60_spill] sm:$0xff] }
 0x185   : > { %v2267_v38 = vpop.eup %2266  ;;  %1764 = vmatprep.mubr.bf16.mxu1 %v1335_v8  ;;  %v1216_v5 = vadd.f32 1.0, %v2265_v59  ;;  %2270 = vtanh.f32 %v1093_v39  ;;  %v1095_v45 = vmul.f32 0.7978846, %v1031_v10  ;;  %v3237_v61 = vadd.f32 %v3647_v21, %v2605_v16  ;;  %v3650_v59 = vld [vmem:[#allocation38_spill] sm:$0xff]  ;;  %v3656_v21 = vld [vmem:[#allocation43_spill] sm:$0xff] }
 0x186   : > { %v2269_v33 = vpop.eup %2268  ;;  %v1276_v58 = vmul.f32 %v1212_v43, %v764_v2  ;;  %v1214_v26 = vadd.f32 1.0, %v2267_v38  ;;  %2272 = vtanh.f32 %v1097_v41  ;;  %v1099_v54 = vmul.f32 0.7978846, %v1035_v6  ;;  %v3649_v6 = vld [vmem:[#allocation17_spill] sm:$0xff]  ;;  %v3652_v41 = vld [vmem:[#allocation42_spill] sm:$0xff] }
 0x187   : > { %v1280_v40 = vmul.f32 %v1216_v5, %v768_v11  ;;  %v1218_v28 = vadd.f32 1.0, %v2269_v33  ;;  %2274 = vtanh.f32 %v1095_v45  ;;  %v3240_v7 = vmul.f32 %v932_v13, %v3185_v1  ;;  %v3651_v13 = vld [vmem:[#allocation29_spill] sm:$0xff] }
 0x188   : > { %v3243_v8 = vmul.f32 %v934_v42, %v3189_v55  ;;  %v933_v20 = vmul.f32 %v869_v37, %v3205_v47  ;;  %v935_v2 = vmul.f32 %v871_v36, %v3215_v32  ;;  %v1278_v39 = vmul.f32 %v1214_v26, %v766_v30  ;;  %v3655_v26 = vld [vmem:[#allocation30_spill] sm:$0xff] }
 0x189   : > { %v1332_v38 = vpack.c.bf16 %v1280_v40, %v1276_v58  ;;  %v1282_v10 = vmul.f32 %v1218_v28, %v770_v4  ;;  %2276 = vtanh.f32 %v1099_v54  ;;  %v773_v16 = vmul.f32 0.5, %v3639_v49  ;;  %v3653_v28 = vld [vmem:[#allocation21_spill] sm:$0xff]  ;;  %v3654_v54 = vld [vmem:[#allocation39_spill] sm:$0xff] }
 0x18a   : > { %3648 = vst [vmem:[#allocation27_spill] sm:$0xff] %v3243_v8  ;;  %v872_v11 = vmul.f32 0.044715, %v3237_v61  ;;  %v1028_v43 = vadd.f32 %v3650_v59, %v3649_v6  ;;  %v1032_v5 = vadd.f32 %v3652_v41, %v3651_v13  ;;  %v777_v37 = vmul.f32 0.5, %v3641_v9  ;;  %v3668_v8 = vld [vmem:[#allocation56_spill] sm:$0xff] }
 0x18b   : > { %1668 = vmatmul.mubr.bf16.gmra.mrb[40].mxu0 %v1332_v38  ;;  %v1334_v42 = vpack.c.bf16 %v1282_v10, %v1278_v39  ;;  %v3256_v36 = vadd.f32 %v3020_v53, %v2607_v17  ;;  %v1030_v30 = vadd.f32 %v3654_v54, %v3653_v28  ;;  %v3261_v4 = vmul.f32 %v933_v20, %v3205_v47 }
 0x18c   : > { %v775_v49 = vmul.f32 0.5, %v3643_v25  ;;  %v1092_v45 = vmul.f32 0.7978846, %v1028_v43  ;;  %v1096_v33 = vmul.f32 0.7978846, %v1032_v5  ;;  %v3265_v58 = vmul.f32 %v935_v2, %v3215_v32  ;;  %v3658_v43 = vld [vmem:[#allocation53_spill] sm:$0xff] }
 0x18d   : > { %1765 = vmatmul.mubr.bf16.gmra.mrb[40].mxu1 %v1334_v42  ;;  %v779_v9 = vmul.f32 0.5, %v3645_v22  ;;  %v1034_v17 = vadd.f32 %v3656_v21, %v3655_v26  ;;  %v1094_v53 = vmul.f32 0.7978846, %v1030_v30  ;;  %v936_v40 = vmul.f32 %v872_v11, %v3237_v61  ;;  %v3657_v11 = vld [vmem:[#allocation37_spill] sm:$0xff] }
 0x18e   : > { %v3272_v38 = vmul.f32 0.5, %v3649_v6  ;;  %v3275_v20 = vmul.f32 0.5, %v3651_v13  ;;  %2278 = vtanh.f32 %v1092_v45  ;;  %v874_v39 = vmul.f32 0.044715, %v3256_v36 }
 0x18f   : > { %v2271_v25 = vpop.eup %2270  ;;  %2280 = vtanh.f32 %v1096_v33  ;;  %v1098_v2 = vmul.f32 0.7978846, %v1034_v17  ;;  %v3280_v22 = vadd.f32 %v3022_v63, %v2609_v18  ;;  %v1037_v6 = vadd.f32 %v3658_v43, %v3657_v11  ;;  %v3661_v43 = vld [vmem:[#allocation33_spill] sm:$0xff] }
 0x190   : > { %v2273_v10 = vpop.eup %2272  ;;  %v1221_v59 = vadd.f32 1.0, %v2271_v25  ;;  %2282 = vtanh.f32 %v1094_v53  ;;  %v1041_v13 = vadd.f32 %v3033_v27, %v2931_v15  ;;  %v774_v42 = vmul.f32 0.5, %v3653_v28 }
 0x191   : > { %v2275_v41 = vpop.eup %2274  ;;  %v1225_v5 = vadd.f32 1.0, %v2273_v10  ;;  %v778_v54 = vmul.f32 0.5, %v3655_v26  ;;  %2284 = vtanh.f32 %v1098_v2  ;;  %v3290_v18 = vadd.f32 %v3028_v50, %v2611_v19  ;;  %v3659_v19 = vld [vmem:[#allocation44_spill] sm:$0xff]  ;;  %v3660_v50 = vld [vmem:[#allocation54_spill] sm:$0xff] }
 0x192   : > { %v1223_v30 = vadd.f32 1.0, %v2275_v41  ;;  %v1101_v63 = vmul.f32 0.7978846, %v1037_v6  ;;  %v1105_v45 = vmul.f32 0.7978846, %v1041_v13  ;;  %v1285_v21 = vmul.f32 %v1221_v59, %v773_v16  ;;  %v3662_v6 = vld [vmem:[#allocation49_spill] sm:$0xff] }
 0x193   : > { %v2277_v33 = vpop.eup %2276  ;;  %v1289_v17 = vmul.f32 %v1225_v5, %v777_v37  ;;  %v3293_v53 = vmul.f32 %v936_v40, %v3237_v61  ;;  %v873_v27 = vmul.f32 0.044715, %v3280_v22  ;;  %v3297_v28 = vmul.f32 %v874_v39, %v3256_v36  ;;  %v3663_v5 = vld [vmem:[#allocation46_spill] sm:$0xff] }
 0x194   : > { %v1227_v25 = vadd.f32 1.0, %v2277_v33  ;;  %v781_v26 = vmul.f32 0.5, %v3657_v11  ;;  %2286 = vtanh.f32 %v1101_v63  ;;  %v1039_v10 = vadd.f32 %v3660_v50, %v3659_v19  ;;  %v3664_v63 = vld [vmem:[#allocation55_spill] sm:$0xff] }
 0x195   : > { %v1337_v2 = vpack.c.bf16 %v1289_v17, %v1285_v21  ;;  %2288 = vtanh.f32 %v1105_v45  ;;  %v1043_v16 = vadd.f32 %v3036_v14, %v2935_v60  ;;  %v1287_v37 = vmul.f32 %v1223_v30, %v775_v49  ;;  %v3665_v49 = vld [vmem:[#allocation34_spill] sm:$0xff] }
 0x196   : > { %v1291_v40 = vmul.f32 %v1227_v25, %v779_v9  ;;  %v875_v59 = vmul.f32 0.044715, %v3290_v18  ;;  %v1036_v13 = vadd.f32 %v3662_v6, %v3661_v43  ;;  %v937_v39 = vmul.f32 %v873_v27, %v3280_v22  ;;  %v3666_v9 = vld [vmem:[#allocation52_spill] sm:$0xff] }
 0x197   : > { %1675 = vmatprep.mubr.bf16.mxu0 %v1337_v2  ;;  %v1103_v11 = vmul.f32 0.7978846, %v1039_v10  ;;  %v1107_v41 = vmul.f32 0.7978846, %v1043_v16  ;;  %v1040_v45 = vadd.f32 %v3664_v63, %v3663_v5  ;;  %v785_v17 = vmul.f32 0.5, %v2931_v15  ;;  %v3667_v2 = vld [vmem:[#allocation47_spill] sm:$0xff] }
 0x198   : > { %v2279_v33 = vpop.eup %2278  ;;  %v1339_v21 = vpack.c.bf16 %v1291_v40, %v1287_v37  ;;  %v1100_v14 = vmul.f32 0.7978846, %v1036_v13  ;;  %v1038_v30 = vadd.f32 %v3666_v9, %v3665_v49  ;;  %v1042_v27 = vadd.f32 %v3668_v8, %v3667_v2 }
 0x199   : > { %v2281_v25 = vpop.eup %2280  ;;  %v1220_v50 = vadd.f32 1.0, %v2279_v33  ;;  %2290 = vtanh.f32 %v1103_v11  ;;  %v1104_v6 = vmul.f32 0.7978846, %v1040_v45  ;;  %v3316_v63 = vmul.f32 %v875_v59, %v3290_v18 }
 0x19a   : > { %v2283_v10 = vpop.eup %2282  ;;  %1772 = vmatprep.mubr.bf16.mxu1 %v1339_v21  ;;  %v1224_v16 = vadd.f32 1.0, %v2281_v25  ;;  %2292 = vtanh.f32 %v1107_v41  ;;  %v1102_v37 = vmul.f32 0.7978846, %v1038_v30  ;;  %v3319_v13 = vmul.f32 %v937_v39, %v3280_v22 }
 0x19b   : > { %v2285_v15 = vpop.eup %2284  ;;  %v1222_v40 = vadd.f32 1.0, %v2283_v10  ;;  %2294 = vtanh.f32 %v1100_v14  ;;  %v1106_v33 = vmul.f32 0.7978846, %v1042_v27  ;;  %v1284_v11 = vmul.f32 %v1220_v50, %v3272_v38  ;;  %v3669_v10 = vld [vmem:[#allocation19_spill] sm:$0xff] }
 0x19c   : > { %v1288_v45 = vmul.f32 %v1224_v16, %v3275_v20  ;;  %v1226_v8 = vadd.f32 1.0, %v2285_v15  ;;  %2296 = vtanh.f32 %v1104_v6  ;;  %v783_v21 = vmul.f32 0.5, %v3659_v19 }
 0x19d   : > { %2298 = vtanh.f32 %v1102_v37  ;;  %v1045_v59 = vadd.f32 %v3061_v51, %v2971_v23  ;;  %v1049_v41 = vadd.f32 %v3122_v48, %v3074_v35  ;;  %v1286_v30 = vmul.f32 %v1222_v40, %v774_v42 }
 0x19e   : > { %v2287_v9 = vpop.eup %2286  ;;  %v1336_v39 = vpack.c.bf16 %v1288_v45, %v1284_v11  ;;  %v1290_v14 = vmul.f32 %v1226_v8, %v778_v54  ;;  %2300 = vtanh.f32 %v1106_v33  ;;  %v787_v20 = vmul.f32 0.5, %v2935_v60  ;;  %v3671_v45 = vld [vmem:[#allocation10_spill] sm:$0xff] }
 0x19f   : > { %v2289_v25 = vpop.eup %2288  ;;  %v1229_v38 = vadd.f32 1.0, %v2287_v9  ;;  %v1109_v50 = vmul.f32 0.7978846, %v1045_v59  ;;  %v1113_v6 = vmul.f32 0.7978846, %v1049_v41  ;;  %v1047_v51 = vadd.f32 %v3081_v52, %v2985_v44  ;;  %v3670_v52 = vld [vmem:[#allocation50_spill] sm:$0xff] }
 0x1a0   : > { %1676 = vmatmul.mubr.bf16.gmra.mrb[44].mxu0 %v1336_v39  ;;  %v1338_v19 = vpack.c.bf16 %v1290_v14, %v1286_v30  ;;  %v1233_v27 = vadd.f32 1.0, %v2289_v25  ;;  %v1051_v48 = vadd.f32 %v3669_v10, %v3078_v0  ;;  %v780_v42 = vmul.f32 0.5, %v3661_v43  ;;  %v3672_v59 = vld [vmem:[#allocation7_spill] sm:$0xff] }
 0x1a1   : > { %v1293_v16 = vmul.f32 %v1229_v38, %v781_v26  ;;  %v784_v54 = vmul.f32 0.5, %v3663_v5  ;;  %2302 = vtanh.f32 %v1109_v50  ;;  %v1111_v60 = vmul.f32 0.7978846, %v1047_v51  ;;  %v3673_v26 = vld [vmem:[#allocation14_spill] sm:$0xff]  ;;  %v3674_v39 = vld [vmem:[#allocation51_spill] sm:$0xff] }
 0x1a2   : > { %1773 = vmatmul.mubr.bf16.gmra.mrb[44].mxu1 %v1338_v19  ;;  %v1297_v37 = vmul.f32 %v1233_v27, %v785_v17  ;;  %2304 = vtanh.f32 %v1113_v6  ;;  %v1115_v15 = vmul.f32 0.7978846, %v1051_v48  ;;  %v782_v33 = vmul.f32 0.5, %v3665_v49  ;;  %v3675_v17 = vld [vmem:[#allocation23_spill] sm:$0xff]  ;;  %v3676_v19 = vld [vmem:[#allocation18_spill] sm:$0xff]  ;;  %v3677_v27 = vld [vmem:[#allocation8_spill] sm:$0xff] }
 0x1a3   : > { %v2291_v40 = vpop.eup %2290  ;;  %v786_v11 = vmul.f32 0.5, %v3667_v2  ;;  %v1044_v8 = vadd.f32 %v3671_v45, %v3670_v52  ;;  %v1048_v41 = vadd.f32 %v3673_v26, %v3672_v59  ;;  %2306 = vtanh.f32 %v1111_v60 }
 0x1a4   : > { %v2293_v43 = vpop.eup %2292  ;;  %v1341_v9 = vpack.c.bf16 %v1297_v37, %v1293_v16  ;;  %v1231_v5 = vadd.f32 1.0, %v2291_v40  ;;  %v1046_v30 = vadd.f32 %v3675_v17, %v3674_v39  ;;  %2308 = vtanh.f32 %v1115_v15 }
 0x1a5   : > { %v2295_v14 = vpop.eup %2294  ;;  %v1235_v25 = vadd.f32 1.0, %v2293_v43  ;;  %v1108_v38 = vmul.f32 0.7978846, %v1044_v8  ;;  %v1112_v49 = vmul.f32 0.7978846, %v1048_v41  ;;  %v789_v6 = vmul.f32 0.5, %v2971_v23 }
 0x1a6   : > { %v2297_v50 = vpop.eup %2296  ;;  %1683 = vmatprep.mubr.bf16.mxu0 %v1341_v9  ;;  %v1228_v2 = vadd.f32 1.0, %v2295_v14  ;;  %v1050_v51 = vadd.f32 %v3677_v27, %v3676_v19  ;;  %v1110_v10 = vmul.f32 0.7978846, %v1046_v30  ;;  %v1295_v16 = vmul.f32 %v1231_v5, %v783_v21 }
 0x1a7   : > { %v2299_v48 = vpop.eup %2298  ;;  %v1299_v37 = vmul.f32 %v1235_v25, %v787_v20  ;;  %v1232_v60 = vadd.f32 1.0, %v2297_v50  ;;  %2310 = vtanh.f32 %v1108_v38  ;;  %v793_v23 = vmul.f32 0.5, %v3074_v35 }
 0x1a8   : > { %v2301_v40 = vpop.eup %2300  ;;  %v1292_v45 = vmul.f32 %v1228_v2, %v780_v42  ;;  %v1230_v26 = vadd.f32 1.0, %v2299_v48  ;;  %2312 = vtanh.f32 %v1112_v49  ;;  %v1114_v15 = vmul.f32 0.7978846, %v1050_v51 }
 0x1a9   : > { %v1343_v8 = vpack.c.bf16 %v1299_v37, %v1295_v16  ;;  %v1296_v41 = vmul.f32 %v1232_v60, %v784_v54  ;;  %v1234_v43 = vadd.f32 1.0, %v2301_v40  ;;  %2314 = vtanh.f32 %v1110_v10  ;;  %v3679_v60 = vld [vmem:[#allocation20_spill] sm:$0xff] }
 0x1aa   : > { %v791_v9 = vmul.f32 0.5, %v2985_v44  ;;  %2316 = vtanh.f32 %v1114_v15  ;;  %v1053_v21 = vadd.f32 %v3163_v56, %v3102_v24  ;;  %v1294_v17 = vmul.f32 %v1230_v26, %v782_v33 }
 0x1ab   : > { %v2303_v20 = vpop.eup %2302  ;;  %1780 = vmatprep.mubr.bf16.mxu1 %v1343_v8  ;;  %v1340_v5 = vpack.c.bf16 %v1296_v41, %v1292_v45  ;;  %v1298_v42 = vmul.f32 %v1234_v43, %v786_v11  ;;  %v1057_v30 = vadd.f32 %v3225_v12, %v3175_v46  ;;  %v795_v25 = vmul.f32 0.5, %v3078_v0 }
 0x1ac   : > { %v2305_v14 = vpop.eup %2304  ;;  %v1237_v54 = vadd.f32 1.0, %v2303_v20  ;;  %v1117_v38 = vmul.f32 0.7978846, %v1053_v21  ;;  %v1055_v44 = vadd.f32 %v3166_v29, %v3109_v34  ;;  %v1059_v50 = vadd.f32 %v3233_v31, %v3179_v3  ;;  %v3681_v20 = vld [vmem:[#allocation9_spill] sm:$0xff] }
 0x1ad   : > { %1684 = vmatmul.mubr.bf16.gmra.mrb[48].mxu0 %v1340_v5  ;;  %v1342_v35 = vpack.c.bf16 %v1298_v42, %v1294_v17  ;;  %v1241_v49 = vadd.f32 1.0, %v2305_v14  ;;  %v1121_v56 = vmul.f32 0.7978846, %v1057_v30  ;;  %v2307_v33 = vpop.eup %2306  ;;  %v788_v2 = vmul.f32 0.5, %v3670_v52  ;;  %v3678_v52 = vld [vmem:[#allocation6_spill] sm:$0xff] }
 0x1ae   : > { %v1301_v11 = vmul.f32 %v1237_v54, %v789_v6  ;;  %2318 = vtanh.f32 %v1117_v38  ;;  %v1119_v12 = vmul.f32 0.7978846, %v1055_v44  ;;  %v2309_v27 = vpop.eup %2308  ;;  %v1239_v51 = vadd.f32 1.0, %v2307_v33 }
 0x1af   : > { %1781 = vmatmul.mubr.bf16.gmra.mrb[48].mxu1 %v1342_v35  ;;  %v1305_v0 = vmul.f32 %v1241_v49, %v793_v23  ;;  %2320 = vtanh.f32 %v1121_v56  ;;  %v1123_v10 = vmul.f32 0.7978846, %v1059_v50  ;;  %v1243_v29 = vadd.f32 1.0, %v2309_v27 }
 0x1b0   : > { %v792_v48 = vmul.f32 0.5, %v3672_v59  ;;  %2322 = vtanh.f32 %v1119_v12  ;;  %v1052_v16 = vadd.f32 %v3157_v62, %v3088_v57  ;;  %v790_v6 = vmul.f32 0.5, %v3674_v39  ;;  %v3680_v62 = vld [vmem:[#allocation5_spill] sm:$0xff] }
 0x1b1   : > { %v2311_v31 = vpop.eup %2310  ;;  %v1345_v37 = vpack.c.bf16 %v1305_v0, %v1301_v11  ;;  %2324 = vtanh.f32 %v1123_v10  ;;  %v1056_v40 = vadd.f32 %v3679_v60, %v3678_v52  ;;  %v1303_v26 = vmul.f32 %v1239_v51, %v791_v9  ;;  %v3682_v9 = vld [vmem:[#allocation15_spill] sm:$0xff] }
 0x1b2   : > { %v2313_v45 = vpop.eup %2312  ;;  %v1307_v15 = vmul.f32 %v1243_v29, %v795_v25  ;;  %v1236_v8 = vadd.f32 1.0, %v2311_v31  ;;  %v1116_v41 = vmul.f32 0.7978846, %v1052_v16  ;;  %v794_v23 = vmul.f32 0.5, %v3676_v19  ;;  %v3683_v25 = vld [vmem:[#allocation13_spill] sm:$0xff] }
 0x1b3   : > { %v2315_v43 = vpop.eup %2314  ;;  %1691 = vmatprep.mubr.bf16.mxu0 %v1345_v37  ;;  %v1240_v59 = vadd.f32 1.0, %v2313_v45  ;;  %v1120_v21 = vmul.f32 0.7978846, %v1056_v40  ;;  %v1054_v5 = vadd.f32 %v3681_v20, %v3680_v62  ;;  %v1058_v38 = vadd.f32 %v3683_v25, %v3682_v9 }
 0x1b4   : > { %v2317_v17 = vpop.eup %2316  ;;  %v1347_v39 = vpack.c.bf16 %v1307_v15, %v1303_v26  ;;  %v1300_v42 = vmul.f32 %v1236_v8, %v788_v2  ;;  %v1238_v30 = vadd.f32 1.0, %v2315_v43  ;;  %2326 = vtanh.f32 %v1116_v41 }
 0x1b5   : > { %v1304_v14 = vmul.f32 %v1240_v59, %v792_v48  ;;  %v1242_v54 = vadd.f32 1.0, %v2317_v17  ;;  %2328 = vtanh.f32 %v1120_v21  ;;  %v1003_v44 = vmul.f32 %v3316_v63, %v3290_v18 }
 0x1b6   : > { %1788 = vmatprep.mubr.bf16.mxu1 %v1347_v39  ;;  %v1302_v19 = vmul.f32 %v1238_v30, %v790_v6  ;;  %v797_v35 = vmul.f32 0.5, %v3102_v24  ;;  %v1118_v49 = vmul.f32 0.7978846, %v1054_v5  ;;  %v1122_v33 = vmul.f32 0.7978846, %v1058_v38 }
 0x1b7   : > { %v1344_v56 = vpack.c.bf16 %v1304_v14, %v1300_v42  ;;  %v1306_v50 = vmul.f32 %v1242_v54, %v794_v23  ;;  %v1061_v11 = vadd.f32 %v3261_v4, %v3205_v47  ;;  %v801_v12 = vmul.f32 0.5, %v3175_v46 }
 0x1b8   : > { %v2319_v2 = vpop.eup %2318  ;;  %v799_v27 = vmul.f32 0.5, %v3109_v34  ;;  %2330 = vtanh.f32 %v1118_v49  ;;  %v1065_v63 = vadd.f32 %v3319_v13, %v3280_v22  ;;  %v1063_v4 = vadd.f32 %v3265_v58, %v3215_v32 }
 0x1b9   : > { %v2321_v0 = vpop.eup %2320  ;;  %1692 = vmatmul.mubr.bf16.gmra.mrb[52].mxu0 %v1344_v56  ;;  %v1346_v51 = vpack.c.bf16 %v1306_v50, %v1302_v19  ;;  %v1245_v24 = vadd.f32 1.0, %v2319_v2  ;;  %2332 = vtanh.f32 %v1122_v33  ;;  %v1125_v10 = vmul.f32 0.7978846, %v1061_v11 }
 0x1ba   : > { %v2323_v29 = vpop.eup %2322  ;;  %v1249_v48 = vadd.f32 1.0, %v2321_v0  ;;  %v1129_v16 = vmul.f32 0.7978846, %v1065_v63  ;;  %v1067_v46 = vadd.f32 %v1003_v44, %v3290_v18  ;;  %v803_v37 = vmul.f32 0.5, %v3179_v3 }
 0x1bb   : > { %v2325_v31 = vpop.eup %2324  ;;  %1789 = vmatmul.mubr.bf16.gmra.mrb[52].mxu1 %v1346_v51  ;;  %v1309_v34 = vmul.f32 %v1245_v24, %v797_v35  ;;  %v1247_v13 = vadd.f32 1.0, %v2323_v29  ;;  %2334 = vtanh.f32 %v1125_v10  ;;  %v1127_v40 = vmul.f32 0.7978846, %v1063_v4 }
 0x1bc   : > { %v1313_v6 = vmul.f32 %v1249_v48, %v801_v12  ;;  %v1251_v60 = vadd.f32 1.0, %v2325_v31  ;;  %2336 = vtanh.f32 %v1129_v16  ;;  %v1002_v45 = vmul.f32 %v3297_v28, %v3256_v36 }
 0x1bd   : > { %v1311_v26 = vmul.f32 %v1247_v13, %v799_v27  ;;  %v1131_v15 = vmul.f32 0.7978846, %v1067_v46  ;;  %v1060_v58 = vadd.f32 %v3240_v7, %v3185_v1  ;;  %2338 = vtanh.f32 %v1127_v40  ;;  %v3684_v7 = vld [vmem:[#allocation27_spill] sm:$0xff] }
 0x1be   : > { %v2327_v8 = vpop.eup %2326  ;;  %v1349_v41 = vpack.c.bf16 %v1313_v6, %v1309_v34  ;;  %v1315_v43 = vmul.f32 %v1251_v60, %v803_v37  ;;  %v1064_v3 = vadd.f32 %v3293_v53, %v3237_v61  ;;  %v796_v23 = vmul.f32 0.5, %v3088_v57 }
 0x1bf   : > { %v2329_v59 = vpop.eup %2328  ;;  %v1244_v21 = vadd.f32 1.0, %v2327_v8  ;;  %2340 = vtanh.f32 %v1131_v15  ;;  %v1124_v20 = vmul.f32 0.7978846, %v1060_v58  ;;  %v800_v5 = vmul.f32 0.5, %v3678_v52 }
 0x1c0   : > { %1699 = vmatprep.mubr.bf16.mxu0 %v1349_v41  ;;  %v1351_v28 = vpack.c.bf16 %v1315_v43, %v1311_v26  ;;  %v1248_v17 = vadd.f32 1.0, %v2329_v59  ;;  %v1128_v39 = vmul.f32 0.7978846, %v1064_v3  ;;  %v1062_v42 = vadd.f32 %v3684_v7, %v3189_v55  ;;  %v3406_v59 = vld [vmem:[%s3469_s4] ss:$0 sm:$0xff] }
 0x1c1   : > { %2342 = vtanh.f32 %v1124_v20  ;;  %v1066_v30 = vadd.f32 %v1002_v45, %v3256_v36  ;;  %v1308_v53 = vmul.f32 %v1244_v21, %v796_v23  ;;  %v798_v52 = vmul.f32 0.5, %v3680_v62 }
 0x1c2   : > { %v2331_v14 = vpop.eup %2330  ;;  %1796 = vmatprep.mubr.bf16.mxu1 %v1351_v28  ;;  %v1312_v54 = vmul.f32 %v1248_v17, %v800_v5  ;;  %2344 = vtanh.f32 %v1128_v39  ;;  %v1126_v38 = vmul.f32 0.7978846, %v1062_v42  ;;  %v802_v35 = vmul.f32 0.5, %v3682_v9 }
 0x1c3   : > { %v2333_v57 = vpop.eup %2332  ;;  %v1246_v25 = vadd.f32 1.0, %v2331_v14  ;;  %v1130_v44 = vmul.f32 0.7978846, %v1066_v30  ;;  %v805_v12 = vmul.f32 0.5, %v3205_v47  ;;  %v809_v27 = vmul.f32 0.5, %v3280_v22 }
 0x1c4   : > { %v1348_v19 = vpack.c.bf16 %v1312_v54, %v1308_v53  ;;  %v1250_v49 = vadd.f32 1.0, %v2333_v57  ;;  %2346 = vtanh.f32 %v1126_v38  ;;  %v807_v29 = vmul.f32 0.5, %v3215_v32 }
 0x1c5   : > { %v2335_v56 = vpop.eup %2334  ;;  %v1310_v33 = vmul.f32 %v1246_v25, %v798_v52  ;;  %2348 = vtanh.f32 %v1130_v44  ;;  %v811_v48 = vmul.f32 0.5, %v3290_v18  ;;  %v804_v22 = vmul.f32 0.5, %v3185_v1 }
 0x1c6   : > { %v2337_v50 = vpop.eup %2336  ;;  %1700 = vmatmul.mubr.bf16.gmra.mrb[56].mxu0 %v1348_v19  ;;  %v1314_v11 = vmul.f32 %v1250_v49, %v802_v35  ;;  %v1253_v2 = vadd.f32 1.0, %v2335_v56  ;;  %v808_v13 = vmul.f32 0.5, %v3237_v61  ;;  %v806_v58 = vmul.f32 0.5, %v3189_v55 }
 0x1c7   : > { %v1257_v63 = vadd.f32 1.0, %v2337_v50  ;;  %v2339_v0 = vpop.eup %2338  ;;  %v810_v8 = vmul.f32 0.5, %v3256_v36 }
 0x1c8   : > { %v1350_v51 = vpack.c.bf16 %v1314_v11, %v1310_v33  ;;  %v1317_v62 = vmul.f32 %v1253_v2, %v805_v12  ;;  %v1255_v9 = vadd.f32 1.0, %v2339_v0 }
 0x1c9   : > { %v2341_v24 = vpop.eup %2340  ;;  %v1321_v10 = vmul.f32 %v1257_v63, %v809_v27 }
 0x1ca   : > { %1797 = vmatmul.mubr.bf16.gmra.mrb[56].mxu1 %v1350_v51  ;;  %v1259_v16 = vadd.f32 1.0, %v2341_v24  ;;  %v1319_v34 = vmul.f32 %v1255_v9, %v807_v29 }
 0x1cb   : > { %v2343_v4 = vpop.eup %2342  ;;  %v1353_v46 = vpack.c.bf16 %v1321_v10, %v1317_v62 }
 0x1cc   : > { %v2345_v31 = vpop.eup %2344  ;;  %v1323_v47 = vmul.f32 %v1259_v16, %v811_v48  ;;  %v1252_v37 = vadd.f32 1.0, %v2343_v4 }
 0x1cd   : > { %1707 = vmatprep.mubr.bf16.mxu0 %v1353_v46  ;;  %v1256_v6 = vadd.f32 1.0, %v2345_v31 }
 0x1ce   : > { %v1355_v60 = vpack.c.bf16 %v1323_v47, %v1319_v34  ;;  %v2347_v40 = vpop.eup %2346  ;;  %v1316_v45 = vmul.f32 %v1252_v37, %v804_v22 }
 0x1cf   : > { %v1320_v26 = vmul.f32 %v1256_v6, %v808_v13  ;;  %v2349_v32 = vpop.eup %2348  ;;  %v1254_v18 = vadd.f32 1.0, %v2347_v40 }
 0x1d0   : > { %1804 = vmatprep.mubr.bf16.mxu1 %v1355_v60  ;;  %v1258_v41 = vadd.f32 1.0, %v2349_v32 }
 0x1d1   : > { %v1352_v15 = vpack.c.bf16 %v1320_v26, %v1316_v45  ;;  %v1318_v43 = vmul.f32 %v1254_v18, %v806_v58 }
 0x1d2   : > { %v1322_v1 = vmul.f32 %v1258_v41, %v810_v8 }
 0x1d3   : > { %1708 = vmatmul.mubr.bf16.gmra.mrb[60].mxu0 %v1352_v15 }
 0x1d4   : > { %v1354_v3 = vpack.c.bf16 %v1322_v1, %v1318_v43 }
 0x1d6   : > { %1805 = vmatmul.mubr.bf16.gmra.mrb[60].mxu1 %v1354_v3 }
 0x233   : > { %v2000_v61 = vpop.f32.mrb[32].mxu0 }
 0x234   : > { %v2001_v23 = vpop.f32.mrb[33].mxu0 }
 0x235   : > { %v2002_v20 = vadd.f32 %v2001_v23, %v2000_v61  ;;  %v2003_v28 = vpop.f32.mrb[34].mxu0 }
 0x236   : > { %v2064_v21 = vpop.f32.mrb[32].mxu1  ;;  %v2004_v5 = vpop.f32.mrb[35].mxu0 }
 0x237   : > { %v2065_v55 = vpop.f32.mrb[33].mxu1  ;;  %v1654_v36 = vadd.f32 %v2002_v20, %v3406_v59  ;;  %v2005_v7 = vadd.f32 %v2004_v5, %v2003_v28 }
 0x238   : > { %v2066_v17 = vadd.f32 %v2065_v55, %v2064_v21  ;;  %v2067_v39 = vpop.f32.mrb[34].mxu1 }
 0x239   : > { %v2068_v42 = vpop.f32.mrb[35].mxu1  ;;  %v1657_v14 = vadd.f32 %v2005_v7, %v3406_v59 }
 0x23a   : > { %v1751_v30 = vadd.f32 %v2066_v17, %v1654_v36  ;;  %v2069_v53 = vadd.f32 %v2068_v42, %v2067_v39 }
 0x23c   : > { %1814 = vst.msk [vmem:[%s3413_s21] sm:$0xff] %vm1813_vm0, %v1751_v30  ;;  %v1754_v54 = vadd.f32 %v2069_v53, %v1657_v14 }
 0x23e   : > { %1815 = vst.msk [vmem:[%s3413_s21 + $0x8] sm:$0xff] %vm1813_vm0, %v1754_v54 }
 0x248   : > { %v2006_v57 = vpop.f32.mrb[36].mxu0 }
 0x249   : > { %v2007_v25 = vpop.f32.mrb[37].mxu0 }
 0x24a   : > { %v2008_v38 = vadd.f32 %v2007_v25, %v2006_v57  ;;  %v2009_v44 = vpop.f32.mrb[38].mxu0 }
 0x24b   : > { %v2070_v19 = vpop.f32.mrb[36].mxu1  ;;  %v2010_v52 = vpop.f32.mrb[39].mxu0 }
 0x24c   : > { %v1662_v35 = vadd.f32 %v2008_v38, %v3406_v59  ;;  %v2071_v49 = vpop.f32.mrb[37].mxu1  ;;  %v2011_v56 = vadd.f32 %v2010_v52, %v2009_v44 }
 0x24d   : > { %v2072_v50 = vadd.f32 %v2071_v49, %v2070_v19  ;;  %v2073_v33 = vpop.f32.mrb[38].mxu1 }
 0x24e   : > { %v1665_v11 = vadd.f32 %v2011_v56, %v3406_v59  ;;  %v2074_v2 = vpop.f32.mrb[39].mxu1 }
 0x24f   : > { %v1759_v12 = vadd.f32 %v2072_v50, %v1662_v35  ;;  %v2075_v27 = vadd.f32 %v2074_v2, %v2073_v33 }
 0x251   : > { %1816 = vst.msk [vmem:[%s3413_s21 + $0x10] sm:$0xff] %vm1813_vm0, %v1759_v12  ;;  %v1762_v63 = vadd.f32 %v2075_v27, %v1665_v11 }
 0x253   : > { %1817 = vst.msk [vmem:[%s3413_s21 + $0x18] sm:$0xff] %vm1813_vm0, %v1762_v63 }
 0x25e   : > { %v2012_v0 = vpop.f32.mrb[40].mxu0 }
 0x25f   : > { %v2013_v51 = vpop.f32.mrb[41].mxu0 }
 0x260   : > { %v2076_v24 = vpop.f32.mrb[40].mxu1  ;;  %v2014_v62 = vadd.f32 %v2013_v51, %v2012_v0  ;;  %v2015_v10 = vpop.f32.mrb[42].mxu0 }
 0x261   : > { %v2077_v9 = vpop.f32.mrb[41].mxu1  ;;  %v2016_v29 = vpop.f32.mrb[43].mxu0 }
 0x262   : > { %v1670_v48 = vadd.f32 %v2014_v62, %v3406_v59  ;;  %v2078_v16 = vadd.f32 %v2077_v9, %v2076_v24  ;;  %v2079_v4 = vpop.f32.mrb[42].mxu1  ;;  %v2017_v46 = vadd.f32 %v2016_v29, %v2015_v10 }
 0x263   : > { %v2080_v31 = vpop.f32.mrb[43].mxu1 }
 0x264   : > { %v1767_v34 = vadd.f32 %v2078_v16, %v1670_v48  ;;  %v1673_v47 = vadd.f32 %v2017_v46, %v3406_v59  ;;  %v2081_v37 = vadd.f32 %v2080_v31, %v2079_v4 }
 0x266   : > { %1818 = vst.msk [vmem:[%s3413_s21 + $0x20] sm:$0xff] %vm1813_vm0, %v1767_v34  ;;  %v1770_v22 = vadd.f32 %v2081_v37, %v1673_v47 }
 0x268   : > { %1819 = vst.msk [vmem:[%s3413_s21 + $0x28] sm:$0xff] %vm1813_vm0, %v1770_v22 }
 0x273   : > { %v2018_v13 = vpop.f32.mrb[44].mxu0 }
 0x274   : > { %v2019_v6 = vpop.f32.mrb[45].mxu0 }
 0x275   : > { %v2082_v60 = vpop.f32.mrb[44].mxu1  ;;  %v2020_v40 = vadd.f32 %v2019_v6, %v2018_v13  ;;  %v2021_v45 = vpop.f32.mrb[46].mxu0 }
 0x276   : > { %v2083_v26 = vpop.f32.mrb[45].mxu1  ;;  %v2022_v32 = vpop.f32.mrb[47].mxu0 }
 0x277   : > { %v1678_v18 = vadd.f32 %v2020_v40, %v3406_v59  ;;  %v2084_v15 = vadd.f32 %v2083_v26, %v2082_v60  ;;  %v2085_v58 = vpop.f32.mrb[46].mxu1  ;;  %v2023_v8 = vadd.f32 %v2022_v32, %v2021_v45 }
 0x278   : > { %v2086_v41 = vpop.f32.mrb[47].mxu1 }
 0x279   : > { %v1775_v43 = vadd.f32 %v2084_v15, %v1678_v18  ;;  %v1681_v1 = vadd.f32 %v2023_v8, %v3406_v59  ;;  %v2087_v3 = vadd.f32 %v2086_v41, %v2085_v58 }
 0x27b   : > { %1820 = vst.msk [vmem:[%s3413_s21 + $0x30] sm:$0xff] %vm1813_vm0, %v1775_v43  ;;  %v1778_v61 = vadd.f32 %v2087_v3, %v1681_v1 }
 0x27d   : > { %1821 = vst.msk [vmem:[%s3413_s21 + $0x38] sm:$0xff] %vm1813_vm0, %v1778_v61 }
 0x280   : > { %v2024_v23 = vpop.f32.mrb[48].mxu0 }
 0x281   : > { %v2025_v21 = vpop.f32.mrb[49].mxu0 }
 0x282   : > { %v2088_v20 = vpop.f32.mrb[48].mxu1  ;;  %v2026_v28 = vadd.f32 %v2025_v21, %v2024_v23  ;;  %v2027_v55 = vpop.f32.mrb[50].mxu0 }
 0x283   : > { %v2089_v5 = vpop.f32.mrb[49].mxu1  ;;  %v2028_v36 = vpop.f32.mrb[51].mxu0 }
 0x284   : > { %v1686_v17 = vadd.f32 %v2026_v28, %v3406_v59  ;;  %v2090_v39 = vadd.f32 %v2089_v5, %v2088_v20  ;;  %v2091_v7 = vpop.f32.mrb[50].mxu1  ;;  %v2029_v42 = vadd.f32 %v2028_v36, %v2027_v55 }
 0x285   : > { %v2092_v30 = vpop.f32.mrb[51].mxu1 }
 0x286   : > { %v1783_v14 = vadd.f32 %v2090_v39, %v1686_v17  ;;  %v1689_v53 = vadd.f32 %v2029_v42, %v3406_v59  ;;  %v2093_v54 = vadd.f32 %v2092_v30, %v2091_v7 }
 0x288   : > { %1822 = vst.msk [vmem:[%s3413_s21 + $0x40] sm:$0xff] %vm1813_vm0, %v1783_v14  ;;  %v1786_v57 = vadd.f32 %v2093_v54, %v1689_v53 }
 0x28a   : > { %1823 = vst.msk [vmem:[%s3413_s21 + $0x48] sm:$0xff] %vm1813_vm0, %v1786_v57 }
 0x28c   : > { %v2030_v25 = vpop.f32.mrb[52].mxu0 }
 0x28d   : > { %v2031_v38 = vpop.f32.mrb[53].mxu0 }
 0x28e   : > { %v2094_v44 = vpop.f32.mrb[52].mxu1  ;;  %v2032_v19 = vadd.f32 %v2031_v38, %v2030_v25  ;;  %v2033_v52 = vpop.f32.mrb[54].mxu0 }
 0x28f   : > { %v2095_v35 = vpop.f32.mrb[53].mxu1  ;;  %v2034_v49 = vpop.f32.mrb[55].mxu0 }
 0x290   : > { %v1694_v56 = vadd.f32 %v2032_v19, %v3406_v59  ;;  %v2096_v50 = vadd.f32 %v2095_v35, %v2094_v44  ;;  %v2097_v33 = vpop.f32.mrb[54].mxu1  ;;  %v2035_v11 = vadd.f32 %v2034_v49, %v2033_v52 }
 0x291   : > { %v2098_v2 = vpop.f32.mrb[55].mxu1 }
 0x292   : > { %v1791_v12 = vadd.f32 %v2096_v50, %v1694_v56  ;;  %v1697_v27 = vadd.f32 %v2035_v11, %v3406_v59  ;;  %v2099_v63 = vadd.f32 %v2098_v2, %v2097_v33 }
 0x294   : > { %1824 = vst.msk [vmem:[%s3413_s21 + $0x50] sm:$0xff] %vm1813_vm0, %v1791_v12  ;;  %v1794_v0 = vadd.f32 %v2099_v63, %v1697_v27 }
 0x296   : > { %1825 = vst.msk [vmem:[%s3413_s21 + $0x58] sm:$0xff] %vm1813_vm0, %v1794_v0 }
 0x299   : > { %v2036_v51 = vpop.f32.mrb[56].mxu0 }
 0x29a   : > { %v2037_v24 = vpop.f32.mrb[57].mxu0 }
 0x29b   : > { %v2038_v62 = vadd.f32 %v2037_v24, %v2036_v51  ;;  %v2039_v10 = vpop.f32.mrb[58].mxu0 }
 0x29c   : > { %v2040_v9 = vpop.f32.mrb[59].mxu0 }
 0x29d   : > { %v2100_v29 = vpop.f32.mrb[56].mxu1  ;;  %v1702_v48 = vadd.f32 %v2038_v62, %v3406_v59  ;;  %v2041_v16 = vadd.f32 %v2040_v9, %v2039_v10 }
 0x29e   : > { %v2101_v4 = vpop.f32.mrb[57].mxu1 }
 0x29f   : > { %v2102_v46 = vadd.f32 %v2101_v4, %v2100_v29  ;;  %v2103_v31 = vpop.f32.mrb[58].mxu1  ;;  %v1705_v34 = vadd.f32 %v2041_v16, %v3406_v59 }
 0x2a0   : > { %v2104_v47 = vpop.f32.mrb[59].mxu1 }
 0x2a1   : > { %v1799_v37 = vadd.f32 %v2102_v46, %v1702_v48  ;;  %v2105_v22 = vadd.f32 %v2104_v47, %v2103_v31 }
 0x2a3   : > { %1826 = vst.msk [vmem:[%s3413_s21 + $0x60] sm:$0xff] %vm1813_vm0, %v1799_v37  ;;  %v1802_v13 = vadd.f32 %v2105_v22, %v1705_v34 }
 0x2a5   : > { %1827 = vst.msk [vmem:[%s3413_s21 + $0x68] sm:$0xff] %vm1813_vm0, %v1802_v13 }
 0x2a6   : > { %v2042_v6 = vpop.f32.mrb[60].mxu0 }
 0x2a7   : > { %v2043_v60 = vpop.f32.mrb[61].mxu0 }
 0x2a8   : > { %v2044_v40 = vadd.f32 %v2043_v60, %v2042_v6  ;;  %v2045_v45 = vpop.f32.mrb[62].mxu0 }
 0x2a9   : > { %v2046_v26 = vpop.f32.mrb[63].mxu0  ;;  %v2106_v32 = vpop.f32.mrb[60].mxu1 }
 0x2aa   : > { %v1710_v18 = vadd.f32 %v2044_v40, %v3406_v59  ;;  %v2047_v15 = vadd.f32 %v2046_v26, %v2045_v45  ;;  %v2107_v58 = vpop.f32.mrb[61].mxu1 }
 0x2ab   : > { %v2108_v8 = vadd.f32 %v2107_v58, %v2106_v32  ;;  %v2109_v41 = vpop.f32.mrb[62].mxu1 }
 0x2ac   : > { %v1713_v43 = vadd.f32 %v2047_v15, %v3406_v59  ;;  %v2110_v1 = vpop.f32.mrb[63].mxu1 }
 0x2ad   : > { %v1807_v3 = vadd.f32 %v2108_v8, %v1710_v18  ;;  %v2111_v61 = vadd.f32 %v2110_v1, %v2109_v41 }
 0x2af   : > { %1828 = vst.msk [vmem:[%s3413_s21 + $0x70] sm:$0xff] %vm1813_vm0, %v1807_v3  ;;  %v1810_v23 = vadd.f32 %v2111_v61, %v1713_v43 }
 0x2b1   : > { %1829 = vst.msk [vmem:[%s3413_s21 + $0x78] sm:$0xff] %vm1813_vm0, %v1810_v23 }
 0x2b2 PF: > { %s16_s18 = sadd.s32 1, %s2388_s18  }
 0x2b3   : > { %p13_p3 = scmp.ge.s32.totalorder %s16_s18, 6  }
 0x2b5   :  { %15 = sbr.rel (!%p13_p3) target bundleno = 1 (0x1), region = 75 }
 0x2bc   :  { %1852 = vsyncpa [#allocation3], 1 }
 0x2bd   :  { %1854 = vsyncpa [#allocation3 + $0x1], 1 }

</bundles_post_ra>
